<compile_context>
chip_gen: v7x
topology: tpu7x:2x2x1
jax: 0.10.0
libtpu: 0.0.40
codegen_flags: <defaults>
</compile_context>

<pallas_src>
import functools

import jax
import jax.numpy as jnp
from jax.experimental import pallas as pl
from jax.experimental.pallas import tpu as pltpu


HID = 500           # dense1 hidden size (from the module)
HID_PAD = 512       # padded to a multiple of 128 lanes
OUT_PAD = 128       # padded output lanes


# ---------------------------------------------------------------------------
# Fused Pallas kernel
# ---------------------------------------------------------------------------
def pca_net_kernel(x_ref, wx_ref, wh_ref, b_ref, w1_hbm, b1_ref, w2_hbm, b2_ref,
                   o_ref, w1_sc, w2_sc, dma_sem, *, B, T, H):
    """Full PCA_net forward (eval mode) in one kernel.

    x_ref:   (T*B, P)        time-major, flattened inputs            [VMEM]
    wx_ref:  (P, 4H)         W_ih^T                                  [VMEM]
    wh_ref:  (H, 4H)         W_hh^T                                  [VMEM]
    b_ref:   (1, 4H)         b_ih + b_hh                             [VMEM]
    w1_hbm:  (T*H, 512)      dense1 weight^T, zero-padded 500->512   [HBM/ANY]
    b1_ref:  (1, 512)        dense1 bias, zero-padded                [VMEM]
    w2_hbm:  (512, 128)      dense2 weight^T, zero-padded            [HBM/ANY]
    b2_ref:  (1, 128)        dense2 bias, zero-padded                [VMEM]
    o_ref:   (B, 128)        lane-dense padded output                [VMEM]
    w1_sc / w2_sc:           VMEM landing buffers for the dense weights
    dma_sem: DMA semaphores (2,)
    """
    # ---- kick off the dense-weight DMAs; they land during the recurrence ----
    w1_cp = pltpu.make_async_copy(w1_hbm, w1_sc, dma_sem.at[0])
    w2_cp = pltpu.make_async_copy(w2_hbm, w2_sc, dma_sem.at[1])
    w1_cp.start()
    w2_cp.start()

    # ---- hoisted input projection: ONE MXU matmul for all timesteps ----
    # rows [t*B:(t+1)*B] of xg are the gate pre-activations of timestep t.
    xg = (jnp.dot(x_ref[...], wx_ref[...], preferred_element_type=jnp.float32)
          + b_ref[...])                                    # (T*B, 4H)

    wh = wh_ref[...]                                       # hoisted load

    # ---- LSTM recurrence, fully unrolled; h/c live in registers ----
    h = jnp.zeros((B, H), jnp.float32)
    c = jnp.zeros((B, H), jnp.float32)
    hs = []
    for t in range(T):                                     # static unroll (T small)
        gates = xg[t * B:(t + 1) * B, :] + jnp.dot(
            h, wh, preferred_element_type=jnp.float32)     # (B, 4H)
        # 2 EUP pushes per step (full-width sigmoid + tanh), then lane slices.
        sig = jax.nn.sigmoid(gates)
        tah = jnp.tanh(gates)
        i = sig[:, 0:H]
        f = sig[:, H:2 * H]
        g = tah[:, 2 * H:3 * H]
        o = sig[:, 3 * H:4 * H]
        c = f * c + i * g
        h = o * jnp.tanh(c)
        hs.append(h)

    # Lane-pack the hidden states once, in registers (PyTorch reshape layout).
    feat = jnp.concatenate(hs, axis=1)                     # (B, T*H)

    # ---- dense1 (Linear + ReLU) + dense2 on lane-dense (B, T*H) features ----
    # TODO(synk): nn.Dropout(0.5) is identity at inference; no RNG mask applied.
    w1_cp.wait()                                           # weights hidden behind recurrence
    h1 = jnp.dot(feat, w1_sc[...], preferred_element_type=jnp.float32) + b1_ref[...]
    h1 = jnp.maximum(h1, 0.0)
    w2_cp.wait()
    out = jnp.dot(h1, w2_sc[...], preferred_element_type=jnp.float32) + b2_ref[...]
    o_ref[...] = out.astype(o_ref.dtype)


# ---------------------------------------------------------------------------
# One-time parameter preparation (transposes + zero padding)
# ---------------------------------------------------------------------------
def prepare_params(params, *, num_frames, num_frames_lstm, n_emotions):
    T, H, E = num_frames, num_frames_lstm, n_emotions
    D = T * H
    f32 = jnp.float32
    wx = params["w_ih"].T.astype(f32)                                  # (P, 4H)
    wh = params["w_hh"].T.astype(f32)                                  # (H, 4H)
    b = (params["b_ih"] + params["b_hh"]).reshape(1, 4 * H).astype(f32)
    w1 = jnp.zeros((D, HID_PAD), f32).at[:, :HID].set(params["w1"].T)
    b1 = jnp.zeros((1, HID_PAD), f32).at[:, :HID].set(params["b1"])
    w2 = jnp.zeros((HID_PAD, OUT_PAD), f32).at[:HID, :E].set(params["w2"].T)
    b2 = jnp.zeros((1, OUT_PAD), f32).at[:, :E].set(params["b2"])
    return {"wx": wx, "wh": wh, "b": b, "w1": w1, "b1": b1, "w2": w2, "b2": b2}


# ---------------------------------------------------------------------------
# Jitted forward wrapper
# ---------------------------------------------------------------------------
@functools.partial(jax.jit, static_argnames=("batch_size", "num_frames",
                                             "pca_size", "num_frames_lstm",
                                             "n_emotions"))
def pca_net_forward(x, prepped, *, batch_size, num_frames, pca_size,
                    num_frames_lstm, n_emotions):
    B, T, P, H, E = batch_size, num_frames, pca_size, num_frames_lstm, n_emotions
    D = T * H
    x = x.reshape(B, T, P).astype(jnp.float32)
    # Time-major + flattened so the per-step gate rows are contiguous sublanes.
    x_tb = jnp.transpose(x, (1, 0, 2)).reshape(T * B, P)

    vmem = pl.BlockSpec(memory_space=pltpu.MemorySpace.VMEM)
    hbm = pl.BlockSpec(memory_space=pl.ANY)       # dense weights: manual DMA
    kernel = functools.partial(pca_net_kernel, B=B, T=T, H=H)

    # Advisory cost hint so XLA schedules neighbouring HLOs around this call.
    flops = 2 * (T * B * P * 4 * H            # input projection
                 + T * B * H * 4 * H          # recurrence matmuls
                 + B * D * HID_PAD            # dense1
                 + B * HID_PAD * OUT_PAD)     # dense2
    transcendentals = T * B * (2 * 4 * H + H)  # sigmoid + tanh(gates) + tanh(c)
    bytes_accessed = 4 * (T * B * P + P * 4 * H + H * 4 * H + 4 * H
                          + D * HID_PAD + HID_PAD
                          + HID_PAD * OUT_PAD + OUT_PAD
                          + B * OUT_PAD)

    out_pad = pl.pallas_call(
        kernel,
        out_shape=jax.ShapeDtypeStruct((B, OUT_PAD), jnp.float32),
        in_specs=[vmem, vmem, vmem, vmem, hbm, vmem, hbm, vmem],
        out_specs=vmem,
        scratch_shapes=[
            pltpu.VMEM((D, HID_PAD), jnp.float32),       # w1 landing buffer
            pltpu.VMEM((HID_PAD, OUT_PAD), jnp.float32),  # w2 landing buffer
            pltpu.SemaphoreType.DMA((2,)),
        ],
        cost_estimate=pl.CostEstimate(flops=flops,
                                      transcendentals=transcendentals,
                                      bytes_accessed=bytes_accessed),
    )(x_tb, prepped["wx"], prepped["wh"], prepped["b"],
      prepped["w1"], prepped["b1"], prepped["w2"], prepped["b2"])

    return out_pad[:, :E].reshape(B, -1)


# ---------------------------------------------------------------------------
# Pure-JAX reference (for correctness check)
# ---------------------------------------------------------------------------
def pca_net_reference(x, params, *, batch_size, num_frames, pca_size,
                      num_frames_lstm, n_emotions):
    B, T, P, H, E = batch_size, num_frames, pca_size, num_frames_lstm, n_emotions
    x = x.reshape(B, T, P).astype(jnp.float32)
    w_ih, w_hh = params["w_ih"], params["w_hh"]
    b = params["b_ih"] + params["b_hh"]
    h = jnp.zeros((B, H), jnp.float32)
    c = jnp.zeros((B, H), jnp.float32)
    hs = []
    for t in range(T):
        gates = x[:, t, :] @ w_ih.T + h @ w_hh.T + b
        i = jax.nn.sigmoid(gates[:, 0:H])
        f = jax.nn.sigmoid(gates[:, H:2 * H])
        g = jnp.tanh(gates[:, 2 * H:3 * H])
        o = jax.nn.sigmoid(gates[:, 3 * H:4 * H])
        c = f * c + i * g
        h = o * jnp.tanh(c)
        hs.append(h)
    feat = jnp.stack(hs, axis=1).reshape(B, T * H)
    h1 = jnp.maximum(feat @ params["w1"].T + params["b1"], 0.0)
    return (h1 @ params["w2"].T + params["b2"]).reshape(B, -1)


# ---------------------------------------------------------------------------
if __name__ == "__main__":
    # Small shapes consistent with the module's forward.
    B = 8           # batch_size
    T = 8           # num_frames
    P = 16          # PCA_size
    H = 16          # num_frames_lstm (LSTM hidden size)  -> T*H = 128 (lane-dense)
    E = 8           # n_emotions

    key = jax.random.PRNGKey(0)
    ks = jax.random.split(key, 9)
    scale = 0.1
    params = {
        "w_ih": scale * jax.random.normal(ks[0], (4 * H, P), jnp.float32),
        "w_hh": scale * jax.random.normal(ks[1], (4 * H, H), jnp.float32),
        "b_ih": scale * jax.random.normal(ks[2], (4 * H,), jnp.float32),
        "b_hh": scale * jax.random.normal(ks[3], (4 * H,), jnp.float32),
        "w1":   scale * jax.random.normal(ks[4], (HID, T * H), jnp.float32),
        "b1":   scale * jax.random.normal(ks[5], (HID,), jnp.float32),
        "w2":   scale * jax.random.normal(ks[6], (E, HID), jnp.float32),
        "b2":   scale * jax.random.normal(ks[7], (E,), jnp.float32),
    }
    x = jax.random.normal(ks[8], (B, T, P), jnp.float32)

    prepped = prepare_params(params, num_frames=T, num_frames_lstm=H, n_emotions=E)

    out = pca_net_forward(x, prepped, batch_size=B, num_frames=T, pca_size=P,
                          num_frames_lstm=H, n_emotions=E)
    out = jax.block_until_ready(out)

    ref = pca_net_reference(x, params, batch_size=B, num_frames=T, pca_size=P,
                            num_frames_lstm=H, n_emotions=E)
    assert out.shape == (B, E), out.shape
    assert jnp.allclose(out, ref, atol=1e-4, rtol=1e-4), \
        float(jnp.max(jnp.abs(out - ref)))

    print("KERNEL_OK")
</pallas_src>

<mosaic_0001>
module attributes {stable_mosaic.version = 11 : i64} {
  func.func @pca_net_kernel(%arg0: memref<64x16xf32, #tpu.memory_space<vmem>>, %arg1: memref<16x64xf32, #tpu.memory_space<vmem>>, %arg2: memref<16x64xf32, #tpu.memory_space<vmem>>, %arg3: memref<1x64xf32, #tpu.memory_space<vmem>>, %arg4: memref<128x512xf32, #tpu.memory_space<any>>, %arg5: memref<1x512xf32, #tpu.memory_space<vmem>>, %arg6: memref<512x128xf32, #tpu.memory_space<any>>, %arg7: memref<1x128xf32, #tpu.memory_space<vmem>>, %arg8: memref<8x128xf32, #tpu.memory_space<vmem>>, %arg9: memref<128x512xf32, #tpu.memory_space<vmem>>, %arg10: memref<512x128xf32, #tpu.memory_space<vmem>>, %arg11: memref<2x!tpu.dma_semaphore, #tpu.memory_space<semaphore_mem>>) attributes {dimension_semantics = [], scalar_prefetch = 0 : i64, scratch_operands = 3 : i64, tpu.core_type = #tpu.core_type<tc>} {
    %c0_i32 = arith.constant 0 : i32
    %0 = tpu.memref_slice %arg11[%c0_i32] : memref<2x!tpu.dma_semaphore, #tpu.memory_space<semaphore_mem>> -> memref<1x!tpu.dma_semaphore, #tpu.memory_space<semaphore_mem>>
    %1 = tpu.memref_squeeze %0 : memref<1x!tpu.dma_semaphore, #tpu.memory_space<semaphore_mem>> -> memref<!tpu.dma_semaphore, #tpu.memory_space<semaphore_mem>>
    tpu.enqueue_dma source(%arg4 : memref<128x512xf32, #tpu.memory_space<any>>) target(%arg9 : memref<128x512xf32, #tpu.memory_space<vmem>>) target_semaphore(%1 : memref<!tpu.dma_semaphore, #tpu.memory_space<semaphore_mem>>)
    %c1_i32 = arith.constant 1 : i32
    %2 = tpu.memref_slice %arg11[%c1_i32] : memref<2x!tpu.dma_semaphore, #tpu.memory_space<semaphore_mem>> -> memref<1x!tpu.dma_semaphore, #tpu.memory_space<semaphore_mem>>
    %3 = tpu.memref_squeeze %2 : memref<1x!tpu.dma_semaphore, #tpu.memory_space<semaphore_mem>> -> memref<!tpu.dma_semaphore, #tpu.memory_space<semaphore_mem>>
    tpu.enqueue_dma source(%arg6 : memref<512x128xf32, #tpu.memory_space<any>>) target(%arg10 : memref<512x128xf32, #tpu.memory_space<vmem>>) target_semaphore(%3 : memref<!tpu.dma_semaphore, #tpu.memory_space<semaphore_mem>>)
    %c0 = arith.constant 0 : index
    %c0_0 = arith.constant 0 : index
    %4 = vector.load %arg0[%c0, %c0_0] : memref<64x16xf32, #tpu.memory_space<vmem>>, vector<64x16xf32>
    %c0_1 = arith.constant 0 : index
    %c0_2 = arith.constant 0 : index
    %5 = vector.load %arg1[%c0_1, %c0_2] : memref<16x64xf32, #tpu.memory_space<vmem>>, vector<16x64xf32>
    %cst = arith.constant dense<0.000000e+00> : vector<64x64xf32>
    %6 = tpu.matmul %4, %5, %cst {dimension_numbers = #tpu.dot_dimension_numbers<[1], [0], [0], [1], [0, 0, 1, 1], [], []>} : vector<64x16xf32>, vector<16x64xf32>, vector<64x64xf32> -> vector<64x64xf32>
    %c0_3 = arith.constant 0 : index
    %c0_4 = arith.constant 0 : index
    %7 = vector.load %arg3[%c0_3, %c0_4] : memref<1x64xf32, #tpu.memory_space<vmem>>, vector<1x64xf32>
    %8 = vector.broadcast %7 : vector<1x64xf32> to vector<64x64xf32>
    %9 = arith.addf %6, %8 : vector<64x64xf32>
    %c0_5 = arith.constant 0 : index
    %c0_6 = arith.constant 0 : index
    %10 = vector.load %arg2[%c0_5, %c0_6] : memref<16x64xf32, #tpu.memory_space<vmem>>, vector<16x64xf32>
    %cst_7 = arith.constant 0.000000e+00 : f32
    %11 = vector.broadcast %cst_7 : f32 to vector<8x16xf32>
    %cst_8 = arith.constant 0.000000e+00 : f32
    %12 = vector.broadcast %cst_8 : f32 to vector<8x16xf32>
    %13 = vector.extract_strided_slice %9 {offsets = [0, 0], sizes = [8, 64], strides = [1, 1]} : vector<64x64xf32> to vector<8x64xf32>
    %cst_9 = arith.constant dense<0.000000e+00> : vector<8x64xf32>
    %14 = tpu.matmul %11, %10, %cst_9 {dimension_numbers = #tpu.dot_dimension_numbers<[1], [0], [0], [1], [0, 0, 1, 1], [], []>} : vector<8x16xf32>, vector<16x64xf32>, vector<8x64xf32> -> vector<8x64xf32>
    %15 = arith.addf %13, %14 : vector<8x64xf32>
    %16 = arith.negf %15 : vector<8x64xf32>
    %17 = math.exp %16 : vector<8x64xf32>
    %cst_10 = arith.constant 1.000000e+00 : f32
    %18 = vector.broadcast %cst_10 : f32 to vector<8x64xf32>
    %19 = arith.addf %18, %17 : vector<8x64xf32>
    %20 = arith.divf %18, %19 : vector<8x64xf32>
    %21 = math.tanh %15 : vector<8x64xf32>
    %22 = vector.extract_strided_slice %20 {offsets = [0, 0], sizes = [8, 16], strides = [1, 1]} : vector<8x64xf32> to vector<8x16xf32>
    %23 = vector.extract_strided_slice %20 {offsets = [0, 16], sizes = [8, 16], strides = [1, 1]} : vector<8x64xf32> to vector<8x16xf32>
    %24 = vector.extract_strided_slice %21 {offsets = [0, 32], sizes = [8, 16], strides = [1, 1]} : vector<8x64xf32> to vector<8x16xf32>
    %25 = vector.extract_strided_slice %20 {offsets = [0, 48], sizes = [8, 16], strides = [1, 1]} : vector<8x64xf32> to vector<8x16xf32>
    %26 = arith.mulf %23, %12 : vector<8x16xf32>
    %27 = arith.mulf %22, %24 : vector<8x16xf32>
    %28 = arith.addf %26, %27 : vector<8x16xf32>
    %29 = math.tanh %28 : vector<8x16xf32>
    %30 = arith.mulf %25, %29 : vector<8x16xf32>
    %31 = vector.extract_strided_slice %9 {offsets = [8, 0], sizes = [8, 64], strides = [1, 1]} : vector<64x64xf32> to vector<8x64xf32>
    %cst_11 = arith.constant dense<0.000000e+00> : vector<8x64xf32>
    %32 = tpu.matmul %30, %10, %cst_11 {dimension_numbers = #tpu.dot_dimension_numbers<[1], [0], [0], [1], [0, 0, 1, 1], [], []>} : vector<8x16xf32>, vector<16x64xf32>, vector<8x64xf32> -> vector<8x64xf32>
    %33 = arith.addf %31, %32 : vector<8x64xf32>
    %34 = arith.negf %33 : vector<8x64xf32>
    %35 = math.exp %34 : vector<8x64xf32>
    %cst_12 = arith.constant 1.000000e+00 : f32
    %36 = vector.broadcast %cst_12 : f32 to vector<8x64xf32>
    %37 = arith.addf %36, %35 : vector<8x64xf32>
    %38 = arith.divf %36, %37 : vector<8x64xf32>
    %39 = math.tanh %33 : vector<8x64xf32>
    %40 = vector.extract_strided_slice %38 {offsets = [0, 0], sizes = [8, 16], strides = [1, 1]} : vector<8x64xf32> to vector<8x16xf32>
    %41 = vector.extract_strided_slice %38 {offsets = [0, 16], sizes = [8, 16], strides = [1, 1]} : vector<8x64xf32> to vector<8x16xf32>
    %42 = vector.extract_strided_slice %39 {offsets = [0, 32], sizes = [8, 16], strides = [1, 1]} : vector<8x64xf32> to vector<8x16xf32>
    %43 = vector.extract_strided_slice %38 {offsets = [0, 48], sizes = [8, 16], strides = [1, 1]} : vector<8x64xf32> to vector<8x16xf32>
    %44 = arith.mulf %41, %28 : vector<8x16xf32>
    %45 = arith.mulf %40, %42 : vector<8x16xf32>
    %46 = arith.addf %44, %45 : vector<8x16xf32>
    %47 = math.tanh %46 : vector<8x16xf32>
    %48 = arith.mulf %43, %47 : vector<8x16xf32>
    %49 = vector.extract_strided_slice %9 {offsets = [16, 0], sizes = [8, 64], strides = [1, 1]} : vector<64x64xf32> to vector<8x64xf32>
    %cst_13 = arith.constant dense<0.000000e+00> : vector<8x64xf32>
    %50 = tpu.matmul %48, %10, %cst_13 {dimension_numbers = #tpu.dot_dimension_numbers<[1], [0], [0], [1], [0, 0, 1, 1], [], []>} : vector<8x16xf32>, vector<16x64xf32>, vector<8x64xf32> -> vector<8x64xf32>
    %51 = arith.addf %49, %50 : vector<8x64xf32>
    %52 = arith.negf %51 : vector<8x64xf32>
    %53 = math.exp %52 : vector<8x64xf32>
    %cst_14 = arith.constant 1.000000e+00 : f32
    %54 = vector.broadcast %cst_14 : f32 to vector<8x64xf32>
    %55 = arith.addf %54, %53 : vector<8x64xf32>
    %56 = arith.divf %54, %55 : vector<8x64xf32>
    %57 = math.tanh %51 : vector<8x64xf32>
    %58 = vector.extract_strided_slice %56 {offsets = [0, 0], sizes = [8, 16], strides = [1, 1]} : vector<8x64xf32> to vector<8x16xf32>
    %59 = vector.extract_strided_slice %56 {offsets = [0, 16], sizes = [8, 16], strides = [1, 1]} : vector<8x64xf32> to vector<8x16xf32>
    %60 = vector.extract_strided_slice %57 {offsets = [0, 32], sizes = [8, 16], strides = [1, 1]} : vector<8x64xf32> to vector<8x16xf32>
    %61 = vector.extract_strided_slice %56 {offsets = [0, 48], sizes = [8, 16], strides = [1, 1]} : vector<8x64xf32> to vector<8x16xf32>
    %62 = arith.mulf %59, %46 : vector<8x16xf32>
    %63 = arith.mulf %58, %60 : vector<8x16xf32>
    %64 = arith.addf %62, %63 : vector<8x16xf32>
    %65 = math.tanh %64 : vector<8x16xf32>
    %66 = arith.mulf %61, %65 : vector<8x16xf32>
    %67 = vector.extract_strided_slice %9 {offsets = [24, 0], sizes = [8, 64], strides = [1, 1]} : vector<64x64xf32> to vector<8x64xf32>
    %cst_15 = arith.constant dense<0.000000e+00> : vector<8x64xf32>
    %68 = tpu.matmul %66, %10, %cst_15 {dimension_numbers = #tpu.dot_dimension_numbers<[1], [0], [0], [1], [0, 0, 1, 1], [], []>} : vector<8x16xf32>, vector<16x64xf32>, vector<8x64xf32> -> vector<8x64xf32>
    %69 = arith.addf %67, %68 : vector<8x64xf32>
    %70 = arith.negf %69 : vector<8x64xf32>
    %71 = math.exp %70 : vector<8x64xf32>
    %cst_16 = arith.constant 1.000000e+00 : f32
    %72 = vector.broadcast %cst_16 : f32 to vector<8x64xf32>
    %73 = arith.addf %72, %71 : vector<8x64xf32>
    %74 = arith.divf %72, %73 : vector<8x64xf32>
    %75 = math.tanh %69 : vector<8x64xf32>
    %76 = vector.extract_strided_slice %74 {offsets = [0, 0], sizes = [8, 16], strides = [1, 1]} : vector<8x64xf32> to vector<8x16xf32>
    %77 = vector.extract_strided_slice %74 {offsets = [0, 16], sizes = [8, 16], strides = [1, 1]} : vector<8x64xf32> to vector<8x16xf32>
    %78 = vector.extract_strided_slice %75 {offsets = [0, 32], sizes = [8, 16], strides = [1, 1]} : vector<8x64xf32> to vector<8x16xf32>
    %79 = vector.extract_strided_slice %74 {offsets = [0, 48], sizes = [8, 16], strides = [1, 1]} : vector<8x64xf32> to vector<8x16xf32>
    %80 = arith.mulf %77, %64 : vector<8x16xf32>
    %81 = arith.mulf %76, %78 : vector<8x16xf32>
    %82 = arith.addf %80, %81 : vector<8x16xf32>
    %83 = math.tanh %82 : vector<8x16xf32>
    %84 = arith.mulf %79, %83 : vector<8x16xf32>
    %85 = vector.extract_strided_slice %9 {offsets = [32, 0], sizes = [8, 64], strides = [1, 1]} : vector<64x64xf32> to vector<8x64xf32>
    %cst_17 = arith.constant dense<0.000000e+00> : vector<8x64xf32>
    %86 = tpu.matmul %84, %10, %cst_17 {dimension_numbers = #tpu.dot_dimension_numbers<[1], [0], [0], [1], [0, 0, 1, 1], [], []>} : vector<8x16xf32>, vector<16x64xf32>, vector<8x64xf32> -> vector<8x64xf32>
    %87 = arith.addf %85, %86 : vector<8x64xf32>
    %88 = arith.negf %87 : vector<8x64xf32>
    %89 = math.exp %88 : vector<8x64xf32>
    %cst_18 = arith.constant 1.000000e+00 : f32
    %90 = vector.broadcast %cst_18 : f32 to vector<8x64xf32>
    %91 = arith.addf %90, %89 : vector<8x64xf32>
    %92 = arith.divf %90, %91 : vector<8x64xf32>
    %93 = math.tanh %87 : vector<8x64xf32>
    %94 = vector.extract_strided_slice %92 {offsets = [0, 0], sizes = [8, 16], strides = [1, 1]} : vector<8x64xf32> to vector<8x16xf32>
    %95 = vector.extract_strided_slice %92 {offsets = [0, 16], sizes = [8, 16], strides = [1, 1]} : vector<8x64xf32> to vector<8x16xf32>
    %96 = vector.extract_strided_slice %93 {offsets = [0, 32], sizes = [8, 16], strides = [1, 1]} : vector<8x64xf32> to vector<8x16xf32>
    %97 = vector.extract_strided_slice %92 {offsets = [0, 48], sizes = [8, 16], strides = [1, 1]} : vector<8x64xf32> to vector<8x16xf32>
    %98 = arith.mulf %95, %82 : vector<8x16xf32>
    %99 = arith.mulf %94, %96 : vector<8x16xf32>
    %100 = arith.addf %98, %99 : vector<8x16xf32>
    %101 = math.tanh %100 : vector<8x16xf32>
    %102 = arith.mulf %97, %101 : vector<8x16xf32>
    %103 = vector.extract_strided_slice %9 {offsets = [40, 0], sizes = [8, 64], strides = [1, 1]} : vector<64x64xf32> to vector<8x64xf32>
    %cst_19 = arith.constant dense<0.000000e+00> : vector<8x64xf32>
    %104 = tpu.matmul %102, %10, %cst_19 {dimension_numbers = #tpu.dot_dimension_numbers<[1], [0], [0], [1], [0, 0, 1, 1], [], []>} : vector<8x16xf32>, vector<16x64xf32>, vector<8x64xf32> -> vector<8x64xf32>
    %105 = arith.addf %103, %104 : vector<8x64xf32>
    %106 = arith.negf %105 : vector<8x64xf32>
    %107 = math.exp %106 : vector<8x64xf32>
    %cst_20 = arith.constant 1.000000e+00 : f32
    %108 = vector.broadcast %cst_20 : f32 to vector<8x64xf32>
    %109 = arith.addf %108, %107 : vector<8x64xf32>
    %110 = arith.divf %108, %109 : vector<8x64xf32>
    %111 = math.tanh %105 : vector<8x64xf32>
    %112 = vector.extract_strided_slice %110 {offsets = [0, 0], sizes = [8, 16], strides = [1, 1]} : vector<8x64xf32> to vector<8x16xf32>
    %113 = vector.extract_strided_slice %110 {offsets = [0, 16], sizes = [8, 16], strides = [1, 1]} : vector<8x64xf32> to vector<8x16xf32>
    %114 = vector.extract_strided_slice %111 {offsets = [0, 32], sizes = [8, 16], strides = [1, 1]} : vector<8x64xf32> to vector<8x16xf32>
    %115 = vector.extract_strided_slice %110 {offsets = [0, 48], sizes = [8, 16], strides = [1, 1]} : vector<8x64xf32> to vector<8x16xf32>
    %116 = arith.mulf %113, %100 : vector<8x16xf32>
    %117 = arith.mulf %112, %114 : vector<8x16xf32>
    %118 = arith.addf %116, %117 : vector<8x16xf32>
    %119 = math.tanh %118 : vector<8x16xf32>
    %120 = arith.mulf %115, %119 : vector<8x16xf32>
    %121 = vector.extract_strided_slice %9 {offsets = [48, 0], sizes = [8, 64], strides = [1, 1]} : vector<64x64xf32> to vector<8x64xf32>
    %cst_21 = arith.constant dense<0.000000e+00> : vector<8x64xf32>
    %122 = tpu.matmul %120, %10, %cst_21 {dimension_numbers = #tpu.dot_dimension_numbers<[1], [0], [0], [1], [0, 0, 1, 1], [], []>} : vector<8x16xf32>, vector<16x64xf32>, vector<8x64xf32> -> vector<8x64xf32>
    %123 = arith.addf %121, %122 : vector<8x64xf32>
    %124 = arith.negf %123 : vector<8x64xf32>
    %125 = math.exp %124 : vector<8x64xf32>
    %cst_22 = arith.constant 1.000000e+00 : f32
    %126 = vector.broadcast %cst_22 : f32 to vector<8x64xf32>
    %127 = arith.addf %126, %125 : vector<8x64xf32>
    %128 = arith.divf %126, %127 : vector<8x64xf32>
    %129 = math.tanh %123 : vector<8x64xf32>
    %130 = vector.extract_strided_slice %128 {offsets = [0, 0], sizes = [8, 16], strides = [1, 1]} : vector<8x64xf32> to vector<8x16xf32>
    %131 = vector.extract_strided_slice %128 {offsets = [0, 16], sizes = [8, 16], strides = [1, 1]} : vector<8x64xf32> to vector<8x16xf32>
    %132 = vector.extract_strided_slice %129 {offsets = [0, 32], sizes = [8, 16], strides = [1, 1]} : vector<8x64xf32> to vector<8x16xf32>
    %133 = vector.extract_strided_slice %128 {offsets = [0, 48], sizes = [8, 16], strides = [1, 1]} : vector<8x64xf32> to vector<8x16xf32>
    %134 = arith.mulf %131, %118 : vector<8x16xf32>
    %135 = arith.mulf %130, %132 : vector<8x16xf32>
    %136 = arith.addf %134, %135 : vector<8x16xf32>
    %137 = math.tanh %136 : vector<8x16xf32>
    %138 = arith.mulf %133, %137 : vector<8x16xf32>
    %139 = vector.extract_strided_slice %9 {offsets = [56, 0], sizes = [8, 64], strides = [1, 1]} : vector<64x64xf32> to vector<8x64xf32>
    %cst_23 = arith.constant dense<0.000000e+00> : vector<8x64xf32>
    %140 = tpu.matmul %138, %10, %cst_23 {dimension_numbers = #tpu.dot_dimension_numbers<[1], [0], [0], [1], [0, 0, 1, 1], [], []>} : vector<8x16xf32>, vector<16x64xf32>, vector<8x64xf32> -> vector<8x64xf32>
    %141 = arith.addf %139, %140 : vector<8x64xf32>
    %142 = arith.negf %141 : vector<8x64xf32>
    %143 = math.exp %142 : vector<8x64xf32>
    %cst_24 = arith.constant 1.000000e+00 : f32
    %144 = vector.broadcast %cst_24 : f32 to vector<8x64xf32>
    %145 = arith.addf %144, %143 : vector<8x64xf32>
    %146 = arith.divf %144, %145 : vector<8x64xf32>
    %147 = math.tanh %141 : vector<8x64xf32>
    %148 = vector.extract_strided_slice %146 {offsets = [0, 0], sizes = [8, 16], strides = [1, 1]} : vector<8x64xf32> to vector<8x16xf32>
    %149 = vector.extract_strided_slice %146 {offsets = [0, 16], sizes = [8, 16], strides = [1, 1]} : vector<8x64xf32> to vector<8x16xf32>
    %150 = vector.extract_strided_slice %147 {offsets = [0, 32], sizes = [8, 16], strides = [1, 1]} : vector<8x64xf32> to vector<8x16xf32>
    %151 = vector.extract_strided_slice %146 {offsets = [0, 48], sizes = [8, 16], strides = [1, 1]} : vector<8x64xf32> to vector<8x16xf32>
    %152 = arith.mulf %149, %136 : vector<8x16xf32>
    %153 = arith.mulf %148, %150 : vector<8x16xf32>
    %154 = arith.addf %152, %153 : vector<8x16xf32>
    %155 = math.tanh %154 : vector<8x16xf32>
    %156 = arith.mulf %151, %155 : vector<8x16xf32>
    %157 = tpu.concatenate %30, %48, %66, %84, %102, %120, %138, %156 in 1 : vector<8x16xf32>, vector<8x16xf32>, vector<8x16xf32>, vector<8x16xf32>, vector<8x16xf32>, vector<8x16xf32>, vector<8x16xf32>, vector<8x16xf32> -> vector<8x128xf32>
    %c0_i32_25 = arith.constant 0 : i32
    %158 = tpu.memref_slice %arg11[%c0_i32_25] : memref<2x!tpu.dma_semaphore, #tpu.memory_space<semaphore_mem>> -> memref<1x!tpu.dma_semaphore, #tpu.memory_space<semaphore_mem>>
    %159 = tpu.memref_squeeze %158 : memref<1x!tpu.dma_semaphore, #tpu.memory_space<semaphore_mem>> -> memref<!tpu.dma_semaphore, #tpu.memory_space<semaphore_mem>>
    tpu.wait_dma2 semaphore(%159 : memref<!tpu.dma_semaphore, #tpu.memory_space<semaphore_mem>>) src(%arg4 : memref<128x512xf32, #tpu.memory_space<any>>) dst(%arg9 : memref<128x512xf32, #tpu.memory_space<vmem>>)
    %c0_26 = arith.constant 0 : index
    %c0_27 = arith.constant 0 : index
    %160 = vector.load %arg9[%c0_26, %c0_27] : memref<128x512xf32, #tpu.memory_space<vmem>>, vector<128x512xf32>
    %cst_28 = arith.constant dense<0.000000e+00> : vector<8x512xf32>
    %161 = tpu.matmul %157, %160, %cst_28 {dimension_numbers = #tpu.dot_dimension_numbers<[1], [0], [0], [1], [0, 0, 1, 1], [], []>} : vector<8x128xf32>, vector<128x512xf32>, vector<8x512xf32> -> vector<8x512xf32>
    %c0_29 = arith.constant 0 : index
    %c0_30 = arith.constant 0 : index
    %162 = vector.load %arg5[%c0_29, %c0_30] : memref<1x512xf32, #tpu.memory_space<vmem>>, vector<1x512xf32>
    %163 = vector.broadcast %162 : vector<1x512xf32> to vector<8x512xf32>
    %164 = arith.addf %161, %163 : vector<8x512xf32>
    %cst_31 = arith.constant 0.000000e+00 : f32
    %165 = vector.broadcast %cst_31 : f32 to vector<8x512xf32>
    %166 = arith.maximumf %164, %165 : vector<8x512xf32>
    %c1_i32_32 = arith.constant 1 : i32
    %167 = tpu.memref_slice %arg11[%c1_i32_32] : memref<2x!tpu.dma_semaphore, #tpu.memory_space<semaphore_mem>> -> memref<1x!tpu.dma_semaphore, #tpu.memory_space<semaphore_mem>>
    %168 = tpu.memref_squeeze %167 : memref<1x!tpu.dma_semaphore, #tpu.memory_space<semaphore_mem>> -> memref<!tpu.dma_semaphore, #tpu.memory_space<semaphore_mem>>
    tpu.wait_dma2 semaphore(%168 : memref<!tpu.dma_semaphore, #tpu.memory_space<semaphore_mem>>) src(%arg6 : memref<512x128xf32, #tpu.memory_space<any>>) dst(%arg10 : memref<512x128xf32, #tpu.memory_space<vmem>>)
    %c0_33 = arith.constant 0 : index
    %c0_34 = arith.constant 0 : index
    %169 = vector.load %arg10[%c0_33, %c0_34] : memref<512x128xf32, #tpu.memory_space<vmem>>, vector<512x128xf32>
    %cst_35 = arith.constant dense<0.000000e+00> : vector<8x128xf32>
    %170 = tpu.matmul %166, %169, %cst_35 {dimension_numbers = #tpu.dot_dimension_numbers<[1], [0], [0], [1], [0, 0, 1, 1], [], []>} : vector<8x512xf32>, vector<512x128xf32>, vector<8x128xf32> -> vector<8x128xf32>
    %c0_36 = arith.constant 0 : index
    %c0_37 = arith.constant 0 : index
    %171 = vector.load %arg7[%c0_36, %c0_37] : memref<1x128xf32, #tpu.memory_space<vmem>>, vector<1x128xf32>
    %172 = vector.broadcast %171 : vector<1x128xf32> to vector<8x128xf32>
    %173 = arith.addf %170, %172 : vector<8x128xf32>
    %c0_38 = arith.constant 0 : index
    %c0_39 = arith.constant 0 : index
    %174 = vector.load %arg8[%c0_38, %c0_39] : memref<8x128xf32, #tpu.memory_space<vmem>>, vector<8x128xf32>
    tpu.vector_store %arg8[%c0_38, %c0_39], %173 {strides = array<i32>} : memref<8x128xf32, #tpu.memory_space<vmem>>, vector<8x128xf32>,
    return
  }
}

</mosaic_0001>

<bundles_post_ra>
// kernel: pca_net_forward.1
= control target key start
LH: loop header
LB: loop body
LE: loop exit
PB: predicated region body
PF: predicated region fallthrough
CT: control target
= control target key end

     0   :  { %vm66_vm0 = vcmask 130048   ;;  %v2015_v4 = vmov 0.0|0.0   ;;  %vm2016_vm1 = vmmov 0   ;;  %v2017_v8 = vmov 0.0   ;;  %s2288_s0 = inlined_call_operand.vmem [shape: f32[64,16], index: 0, kind: input, shape index: {}]   ;;  %s2289_s1 = inlined_call_operand.vmem [shape: f32[16,64], index: 1, kind: input, shape index: {}]   ;;  %s2290_s2 = inlined_call_operand.vmem [shape: f32[16,64], index: 2, kind: input, shape index: {}]   ;;  %s2291_s3 = inlined_call_operand.vmem [shape: f32[1,64], index: 3, kind: input, shape index: {}]   ;;  %s2292_s4 = inlined_call_operand.hbm [shape: f32[128,512], index: 4, kind: input, shape index: {}]   ;;  %s2293_s5 = inlined_call_operand.vmem [shape: f32[1,512], index: 5, kind: input, shape index: {}]   ;;  %s2294_s6 = inlined_call_operand.hbm [shape: f32[512,128], index: 6, kind: input, shape index: {}]   ;;  %s2295_s7 = inlined_call_operand.vmem [shape: f32[1,128], index: 7, kind: input, shape index: {}]   ;;  %s2296_s8 = inlined_call_operand.hbm [shape: f32[8,128], index: 8, kind: output, shape index: {}]  }
   0x1   :  { %v57_v0 = vld [vmem:[%s2289_s1] sm:$0xff]  ;;  %v58_v1 = vld [vmem:[%s2289_s1 + $0x8] sm:$0xff]  ;;  %1714 = vmatprep.subr.bf16.mxu1 %v2015_v4  ;;  %1658 = vmatprep.mubr.msk.f32.mxu1 %vm2016_vm1, %v2017_v8 }
   0x2   :  { %v49_v2 = vld [vmem:[%s2288_s0] sm:$0xff]  ;;  %v1710_v3 = vpack.c.bf16 %v58_v1, %v57_v0  ;;  %v197_v6 = vld [vmem:[%s2290_s2 + $0x8] sm:$0xff] }
   0x3   :  { %1642 = vmatprep.mubr.msk.f32.mxu0 %vm66_vm0, %v49_v2  ;;  %v196_v5 = vld [vmem:[%s2290_s2] sm:$0xff] }
   0x4   :  { %v2090_v7 = vpack.c.bf16 %v197_v6, %v196_v5 }
   0x5   :  { %13 = vsyncpa [#allocation6], 0  ;;  %1711 = vmatprep.subr.bf16.mxu0 %v1710_v3  ;;  %v50_v9 = vld [vmem:[%s2288_s0 + $0x8] sm:$0xff]  ;;  %v2111_v10 = vld [vmem:[%s2291_s3] ss:$0 sm:$0xff]  ;;  %s2018_s17 = smov 96  }
   0x6   :  { %1713 = vmatpush3.bf16.msra.mxu0 %v1710_v3  ;;  %1716 = vmatpush3.bf16.msra.mxu1 %v2090_v7  ;;  %s2019_s3 = smov 16   ;;  %s2020_s18 = smov 32   ;;  %v51_v45 = vld [vmem:[%s2288_s0 + $0x10] sm:$0xff]  ;;  %v52_v46 = vld [vmem:[%s2288_s0 + $0x18] sm:$0xff] }
   0x7   :  { %1717 = vmatprep.subr.bf16.mxu1 %v2015_v4  ;;  %1726 = vmatprep.subr.bf16.mxu0 %v2015_v4  ;;  %s2021_s19 = smov 80   ;;  %s2023_s10 = smov 112  }
   0x8   :  { %s2024_s11 = smov [#allocation2]   ;;  %s2025_s13 = smov [#allocation3]  }
   0x9   :  { %1643 = vmatmul.mubr.msk.f32.vlgmr.msra.gmra.mrb[0].mxu0 %vm66_vm0, %v50_v9  ;;  %1659 = vmatmul.mubr.f32.vlgmr.msra.gmra.mrb[0].mxu1 %v2017_v8  ;;  %s33_s12 = sshll.u32 %s2024_s11, 4  ;;  %s45_s14 = sshll.u32 %s2025_s13, 4  ;;  %s34_s12 = int_to_ptr.vmem [resolvable:$true] %s33_s12  ;;  %s46_s14 = int_to_ptr.vmem [resolvable:$true] %s45_s14 }
   0xa   :  { %1719 = vmatpush3.bf16.msra.mxu1 %v2090_v7  ;;  %1665 = vmatprep.mubr.msk.f32.mxu1 %vm2016_vm1, %v2017_v8  ;;  %s1943_s2 = scalar_lea.hbm %s2292_s4, 8192 }
   0xb   :  { %1720 = vmatprep.subr.bf16.mxu1 %v2015_v4  ;;  %1728 = vmatpush3.bf16.msra.mxu0 %v2090_v7  ;;  %p1944_p0 = scmp.ne.s32.totalorder %s2292_s4, %s1943_s2  ;;  %p1947_p1 = scmp.lt.u32.totalorder %s1943_s2, %s2292_s4 }
   0xc   :  { %1732 = vmatprep.subr.bf16.mxu0 %v2015_v4  ;;  %1645 = vmatprep.mubr.msk.f32.mxu0 %vm66_vm0, %v51_v45 }
   0xd   :  { %1646 = vmatmul.mubr.msk.f32.gmra.mrb[2].mxu0 %vm66_vm0, %v52_v46  ;;  %p1949_p2 = pnand %p1947_p1, %p1944_p0 }
  0xdc   :  { %v1644_v11 = vpop.f32.mrb[0].mxu0  ;;  %v267_v12 = vpop.f32.mrb[0].mxu1 }
  0xdd   :  { %v157_v13 = vpop.f32.mrb[1].mxu0  ;;  %v1660_v14 = vpop.f32.mrb[1].mxu1  ;;  %v163_v31 = vadd.f32 %v1644_v11, %v2111_v10 }
  0xde   :  { %v158_v15 = vadd.f32 %v2111_v10, %v157_v13 }
  0xe0   :  { %v271_v16 = vadd.f32 %v267_v12, %v158_v15  ;;  %v1647_v50 = vpop.f32.mrb[2].mxu0 }
  0xe1   :  { %v167_v51 = vpop.f32.mrb[3].mxu0  ;;  %v173_v11 = vadd.f32 %v1647_v50, %v2111_v10 }
  0xe2   :  { %1879 = vtanh.f32 %v271_v16  ;;  %v1516_v18 = vmul.f32 -1.442695, %v271_v16  ;;  %v168_v53 = vadd.f32 %v2111_v10, %v167_v51 }
  0xe4   :  { %1881 = vpow2.f32 %v1516_v18 }
  0xec   :  { %v1880_v17 = vpop.eup %1879 }
  0xed   :  { %281 = vrot.lane.b32.xlu0 %v1880_v17, %s2018_s17 }
  0xee   :  { %v1882_v19 = vpop.eup %1881 }
  0xef   :  { %v275_v20 = vadd.f32 1.0, %v1882_v19 }
  0xf1   :  { %1883 = vrcp.f32 %v275_v20 }
  0xfb   :  { %v1884_v21 = vpop.eup %1883 }
  0xfc   :  { %v279_v24 = vmul.f32 0.0, %v1884_v21 }
 0x15f   :  { %v282_v22 = vpop.permute.xlu0 %281 }
 0x160   :  { %v284_v23 = vmul.f32 %v1884_v21, %v282_v22 }
 0x162   :  { %286 = vrot.lane.b32.xlu0 %v284_v23, %s2019_s3 }
 0x1d4   :  { %v287_v25 = vpop.permute.xlu0 %286 }
 0x1d5   :  { %v289_v26 = vadd.f32 %v287_v25, %v279_v24  ;;  %v53_v24 = vld [vmem:[%s2288_s0 + $0x20] sm:$0xff]  ;;  %v54_v25 = vld [vmem:[%s2288_s0 + $0x28] sm:$0xff] }
 0x1d6   :  { %1648 = vmatprep.mubr.msk.f32.mxu0 %vm66_vm0, %v53_v24 }
 0x1d7   :  { %1885 = vtanh.f32 %v289_v26  ;;  %1649 = vmatmul.mubr.msk.f32.gmra.mrb[4].mxu0 %vm66_vm0, %v54_v25 }
 0x1e1   :  { %v1886_v27 = vpop.eup %1885 }
 0x1e2   :  { %292 = vrot.lane.b32.xlu1 %v1886_v27, %s2020_s18  ;;  %v56_v27 = vld [vmem:[%s2288_s0 + $0x38] sm:$0xff] }
 0x254   :  { %v293_v28 = vpop.permute.xlu1 %292 }
 0x255   :  { %v295_v29 = vmul.f32 %v1884_v21, %v293_v28 }
 0x257   :  { %297 = vrot.lane.b32.xlu1 %v295_v29, %s2021_s19 }
 0x2c9   :  { %v2118_v30 = vpop.permute.xlu1 %297 }
 0x2ca   :  { %1666 = vmatmul.mubr.msk.f32.vlgmr.msra.gmra.mrb[2].mxu1 %vm66_vm0, %v2118_v30 }
 0x2cb   :  { %1722 = vmatpush3.bf16.msra.mxu1 %v2090_v7  ;;  %1672 = vmatprep.mubr.msk.f32.mxu1 %vm2016_vm1, %v2017_v8 }
 0x2cc   :  { %1723 = vmatprep.subr.bf16.mxu1 %v2015_v4 }
 0x39d   :  { %v367_v32 = vpop.f32.mrb[2].mxu1 }
 0x39e   :  { %v371_v33 = vadd.f32 %v367_v32, %v163_v31  ;;  %v1667_v34 = vpop.f32.mrb[3].mxu1  ;;  %v1650_v32 = vpop.f32.mrb[4].mxu0 }
 0x3a0   :  { %1887 = vtanh.f32 %v371_v33  ;;  %v1518_v36 = vmul.f32 -1.442695, %v371_v33  ;;  %v177_v33 = vpop.f32.mrb[5].mxu0 }
 0x3a2   :  { %1889 = vpow2.f32 %v1518_v36 }
 0x3aa   :  { %v1888_v35 = vpop.eup %1887 }
 0x3ab   :  { %381 = vrot.lane.b32.xlu0 %v1888_v35, %s2018_s17 }
 0x3ac   :  { %v1890_v37 = vpop.eup %1889 }
 0x3ad   :  { %v375_v38 = vadd.f32 1.0, %v1890_v37  ;;  %v178_v37 = vadd.f32 %v2111_v10, %v177_v33 }
 0x3af   :  { %1891 = vrcp.f32 %v375_v38 }
 0x3b9   :  { %v1892_v39 = vpop.eup %1891 }
 0x3ba   :  { %v379_v42 = vmul.f32 %v1892_v39, %v289_v26  ;;  %v55_v26 = vld [vmem:[%s2288_s0 + $0x30] sm:$0xff]  ;;  %s2022_s0 = smov 48  }
 0x3bb   :  { %1651 = vmatprep.mubr.msk.f32.mxu0 %vm66_vm0, %v55_v26 }
 0x3bc   :  { %1652 = vmatmul.mubr.msk.f32.gmra.mrb[6].mxu0 %vm66_vm0, %v56_v27 }
 0x3bd   :  { %1686 = vmatprep.mubr.msk.f32.mxu0 %vm2016_vm1, %v2017_v8 }
 0x41d   :  { %v382_v40 = vpop.permute.xlu0 %381 }
 0x41e   :  { %v384_v41 = vmul.f32 %v1892_v39, %v382_v40 }
 0x420   :  { %386 = vrot.lane.b32.xlu1 %v384_v41, %s2019_s3 }
 0x48f   :  { %v2186_v34 = vpop.f32.mrb[6].mxu0 }
 0x490   :  { %v187_v35 = vpop.f32.mrb[7].mxu0  ;;  %v193_v33 = vadd.f32 %v2186_v34, %v2111_v10 }
 0x492   :  { %v387_v43 = vpop.permute.xlu1 %386 }
 0x493   :  { %v389_v44 = vadd.f32 %v387_v43, %v379_v42 }
 0x495   :  { %1893 = vtanh.f32 %v389_v44 }
 0x49f   :  { %v1894_v47 = vpop.eup %1893 }
 0x4a0   :  { %392 = vrot.lane.b32.xlu0 %v1894_v47, %s2020_s18 }
 0x512   :  { %v393_v48 = vpop.permute.xlu0 %392 }
 0x513   :  { %v2138_v49 = vmul.f32 %v1892_v39, %v393_v48 }
 0x515   :  { %397 = vrot.lane.b32.xlu1 %v2138_v49, %s2021_s19 }
 0x587   :  { %v398_v52 = vpop.permute.xlu1 %397 }
 0x588   :  { %1673 = vmatmul.mubr.msk.f32.vlgmr.msra.gmra.mrb[4].mxu1 %vm66_vm0, %v398_v52 }
 0x589   :  { %1725 = vmatpush3.bf16.msra.mxu1 %v2090_v7  ;;  %1679 = vmatprep.mubr.msk.f32.mxu1 %vm2016_vm1, %v2017_v8 }
 0x58a   :  { %1729 = vmatprep.subr.bf16.mxu1 %v2015_v4 }
 0x65b   :  { %v467_v54 = vpop.f32.mrb[4].mxu1 }
 0x65c   :  { %v471_v55 = vadd.f32 %v467_v54, %v168_v53  ;;  %v1674_v56 = vpop.f32.mrb[5].mxu1 }
 0x65d   :  { %v183_v56 = vadd.f32 %v1650_v32, %v2111_v10 }
 0x65e   :  { %1895 = vtanh.f32 %v471_v55  ;;  %v1520_v58 = vmul.f32 -1.442695, %v471_v55 }
 0x660   :  { %1897 = vpow2.f32 %v1520_v58 }
 0x668   :  { %v1896_v57 = vpop.eup %1895 }
 0x669   :  { %481 = vrot.lane.b32.xlu0 %v1896_v57, %s2018_s17 }
 0x66a   :  { %v1898_v59 = vpop.eup %1897 }
 0x66b   :  { %v475_v60 = vadd.f32 1.0, %v1898_v59 }
 0x66d   :  { %1899 = vrcp.f32 %v475_v60 }
 0x677   :  { %v1900_v61 = vpop.eup %1899 }
 0x678   :  { %v479_v0 = vmul.f32 %v1900_v61, %v389_v44 }
 0x6db   :  { %v482_v62 = vpop.permute.xlu0 %481 }
 0x6dc   :  { %v484_v63 = vmul.f32 %v1900_v61, %v482_v62 }
 0x6de   :  { %486 = vrot.lane.b32.xlu1 %v484_v63, %s2019_s3 }
 0x750   :  { %v487_v1 = vpop.permute.xlu1 %486 }
 0x751   :  { %v489_v2 = vadd.f32 %v487_v1, %v479_v0 }
 0x753   :  { %1901 = vtanh.f32 %v489_v2 }
 0x75d   :  { %v1902_v3 = vpop.eup %1901 }
 0x75e   :  { %492 = vrot.lane.b32.xlu0 %v1902_v3, %s2020_s18 }
 0x7d0   :  { %v493_v5 = vpop.permute.xlu0 %492 }
 0x7d1   :  { %v2151_v6 = vmul.f32 %v1900_v61, %v493_v5 }
 0x7d3   :  { %497 = vrot.lane.b32.xlu1 %v2151_v6, %s2021_s19 }
 0x845   :  { %v498_v9 = vpop.permute.xlu1 %497 }
 0x846   :  { %1680 = vmatmul.mubr.msk.f32.vlgmr.msra.gmra.mrb[6].mxu1 %vm66_vm0, %v498_v9 }
 0x847   :  { %1731 = vmatpush3.bf16.msra.mxu1 %v2090_v7  ;;  %1693 = vmatprep.mubr.msk.f32.mxu1 %vm2016_vm1, %v2017_v8 }
 0x848   :  { %1735 = vmatprep.subr.bf16.mxu1 %v2015_v4 }
 0x919   :  { %v567_v12 = vpop.f32.mrb[6].mxu1 }
 0x91a   :  { %v571_v13 = vadd.f32 %v567_v12, %v173_v11  ;;  %v1681_v14 = vpop.f32.mrb[7].mxu1 }
 0x91b   :  { %v188_v14 = vadd.f32 %v2111_v10, %v187_v35 }
 0x91c   :  { %1903 = vtanh.f32 %v571_v13  ;;  %v1522_v16 = vmul.f32 -1.442695, %v571_v13 }
 0x91e   :  { %1905 = vpow2.f32 %v1522_v16 }
 0x926   :  { %v1904_v15 = vpop.eup %1903 }
 0x927   :  { %581 = vrot.lane.b32.xlu0 %v1904_v15, %s2018_s17 }
 0x928   :  { %v1906_v17 = vpop.eup %1905 }
 0x929   :  { %v575_v18 = vadd.f32 1.0, %v1906_v17 }
 0x92b   :  { %1907 = vrcp.f32 %v575_v18 }
 0x935   :  { %v1908_v19 = vpop.eup %1907 }
 0x936   :  { %v579_v4 = vmul.f32 %v1908_v19, %v489_v2 }
 0x999   :  { %v582_v20 = vpop.permute.xlu0 %581 }
 0x99a   :  { %v584_v21 = vmul.f32 %v1908_v19, %v582_v20 }
 0x99c   :  { %586 = vrot.lane.b32.xlu1 %v584_v21, %s2019_s3 }
 0xa0e   :  { %v587_v22 = vpop.permute.xlu1 %586 }
 0xa0f   :  { %v589_v23 = vadd.f32 %v587_v22, %v579_v4 }
 0xa11   :  { %1909 = vtanh.f32 %v589_v23 }
 0xa1b   :  { %v1910_v28 = vpop.eup %1909 }
 0xa1c   :  { %592 = vrot.lane.b32.xlu0 %v1910_v28, %s2020_s18 }
 0xa8e   :  { %v593_v29 = vpop.permute.xlu0 %592 }
 0xa8f   :  { %v2182_v31 = vmul.f32 %v1908_v19, %v593_v29 }
 0xa91   :  { %597 = vrot.lane.b32.xlu1 %v2182_v31, %s2021_s19 }
 0xb03   :  { %v598_v36 = vpop.permute.xlu1 %597 }
 0xb04   :  { %1687 = vmatmul.mubr.msk.f32.vlgmr.msra.gmra.mrb[8].mxu0 %vm66_vm0, %v598_v36 }
 0xb05   :  { %1734 = vmatpush3.bf16.msra.mxu0 %v2090_v7  ;;  %1700 = vmatprep.mubr.msk.f32.mxu0 %vm2016_vm1, %v2017_v8 }
 0xbd7   :  { %v667_v38 = vpop.f32.mrb[8].mxu0 }
 0xbd8   :  { %v671_v39 = vadd.f32 %v667_v38, %v178_v37  ;;  %v1688_v40 = vpop.f32.mrb[9].mxu0 }
 0xbda   :  { %1911 = vtanh.f32 %v671_v39  ;;  %v1524_v42 = vmul.f32 -1.442695, %v671_v39 }
 0xbdc   :  { %1913 = vpow2.f32 %v1524_v42 }
 0xbe4   :  { %v1912_v41 = vpop.eup %1911 }
 0xbe5   :  { %681 = vrot.lane.b32.xlu0 %v1912_v41, %s2018_s17 }
 0xbe6   :  { %v1914_v43 = vpop.eup %1913 }
 0xbe7   :  { %v675_v44 = vadd.f32 1.0, %v1914_v43 }
 0xbe9   :  { %1915 = vrcp.f32 %v675_v44 }
 0xbf3   :  { %v1916_v45 = vpop.eup %1915 }
 0xbf4   :  { %v679_v48 = vmul.f32 %v1916_v45, %v589_v23 }
 0xc57   :  { %v682_v46 = vpop.permute.xlu0 %681 }
 0xc58   :  { %v684_v47 = vmul.f32 %v1916_v45, %v682_v46 }
 0xc5a   :  { %686 = vrot.lane.b32.xlu1 %v684_v47, %s2019_s3 }
 0xccc   :  { %v687_v50 = vpop.permute.xlu1 %686 }
 0xccd   :  { %v689_v51 = vadd.f32 %v687_v50, %v679_v48 }
 0xccf   :  { %1917 = vtanh.f32 %v689_v51 }
 0xcd9   :  { %v1918_v52 = vpop.eup %1917 }
 0xcda   :  { %692 = vrot.lane.b32.xlu0 %v1918_v52, %s2020_s18 }
 0xd4c   :  { %v693_v53 = vpop.permute.xlu0 %692 }
 0xd4d   :  { %v2196_v54 = vmul.f32 %v1916_v45, %v693_v53 }
 0xd4f   :  { %697 = vrot.lane.b32.xlu1 %v2196_v54, %s2021_s19 }
 0xdc1   :  { %v698_v55 = vpop.permute.xlu1 %697 }
 0xdc2   :  { %1694 = vmatmul.mubr.msk.f32.vlgmr.msra.gmra.mrb[8].mxu1 %vm66_vm0, %v698_v55 }
 0xdc3   :  { %1737 = vmatpush3.bf16.msra.mxu1 %v2090_v7  ;;  %1707 = vmatprep.mubr.msk.f32.mxu1 %vm2016_vm1, %v2017_v8 }
 0xe95   :  { %v767_v57 = vpop.f32.mrb[8].mxu1 }
 0xe96   :  { %v771_v58 = vadd.f32 %v767_v57, %v183_v56  ;;  %v1695_v59 = vpop.f32.mrb[9].mxu1 }
 0xe98   :  { %1919 = vtanh.f32 %v771_v58  ;;  %v1526_v61 = vmul.f32 -1.442695, %v771_v58 }
 0xe9a   :  { %1921 = vpow2.f32 %v1526_v61 }
 0xea2   :  { %v1920_v60 = vpop.eup %1919 }
 0xea3   :  { %781 = vrot.lane.b32.xlu0 %v1920_v60, %s2018_s17 }
 0xea4   :  { %v1922_v62 = vpop.eup %1921 }
 0xea5   :  { %v775_v63 = vadd.f32 1.0, %v1922_v62 }
 0xea7   :  { %1923 = vrcp.f32 %v775_v63 }
 0xeb1   :  { %v1924_v0 = vpop.eup %1923 }
 0xeb2   :  { %v779_v2 = vmul.f32 %v1924_v0, %v689_v51 }
 0xf15   :  { %v782_v1 = vpop.permute.xlu0 %781 }
 0xf16   :  { %v784_v7 = vmul.f32 %v1924_v0, %v782_v1 }
 0xf18   :  { %786 = vrot.lane.b32.xlu1 %v784_v7, %s2019_s3 }
 0xf8a   :  { %v787_v3 = vpop.permute.xlu1 %786 }
 0xf8b   :  { %v789_v5 = vadd.f32 %v787_v3, %v779_v2 }
 0xf8d   :  { %1925 = vtanh.f32 %v789_v5 }
 0xf97   :  { %v1926_v9 = vpop.eup %1925 }
 0xf98   :  { %792 = vrot.lane.b32.xlu0 %v1926_v9, %s2020_s18 }
0x100a   :  { %v793_v11 = vpop.permute.xlu0 %792 }
0x100b   :  { %v795_v12 = vmul.f32 %v1924_v0, %v793_v11 }
0x100d   :  { %797 = vrot.lane.b32.xlu1 %v795_v12, %s2021_s19 }
0x107f   :  { %v798_v13 = vpop.permute.xlu1 %797 }
0x1080   :  { %1701 = vmatmul.mubr.msk.f32.vlgmr.msra.gmra.mrb[10].mxu0 %vm66_vm0, %v798_v13 }
0x1153   :  { %v867_v15 = vpop.f32.mrb[10].mxu0 }
0x1154   :  { %v871_v16 = vadd.f32 %v867_v15, %v188_v14  ;;  %v1702_v17 = vpop.f32.mrb[11].mxu0 }
0x1156   :  { %1927 = vtanh.f32 %v871_v16  ;;  %v1528_v19 = vmul.f32 -1.442695, %v871_v16 }
0x1158   :  { %1929 = vpow2.f32 %v1528_v19 }
0x1160   :  { %v1928_v18 = vpop.eup %1927 }
0x1161   :  { %881 = vrot.lane.b32.xlu0 %v1928_v18, %s2018_s17 }
0x1162   :  { %v1930_v20 = vpop.eup %1929 }
0x1163   :  { %v875_v21 = vadd.f32 1.0, %v1930_v20 }
0x1165   :  { %1931 = vrcp.f32 %v875_v21 }
0x116f   :  { %v1932_v4 = vpop.eup %1931 }
0x1170   :  { %v879_v24 = vmul.f32 %v1932_v4, %v789_v5 }
0x11d3   :  { %v882_v22 = vpop.permute.xlu0 %881 }
0x11d4   :  { %v884_v23 = vmul.f32 %v1932_v4, %v882_v22 }
0x11d6   :  { %886 = vrot.lane.b32.xlu1 %v884_v23, %s2019_s3 }
0x1248   :  { %v887_v25 = vpop.permute.xlu1 %886 }
0x1249   :  { %v889_v26 = vadd.f32 %v887_v25, %v879_v24 }
0x124b   :  { %1933 = vtanh.f32 %v889_v26 }
0x1255   :  { %v1934_v27 = vpop.eup %1933 }
0x1256   :  { %892 = vrot.lane.b32.xlu0 %v1934_v27, %s2020_s18 }
0x12c8   :  { %v893_v28 = vpop.permute.xlu0 %892 }
0x12c9   :  { %v895_v29 = vmul.f32 %v1932_v4, %v893_v28 }
0x12cb   :  { %897 = vrot.lane.b32.xlu1 %v895_v29, %s2021_s19 }
0x133d   :  { %v898_v32 = vpop.permute.xlu1 %897 }
0x133e   :  { %1708 = vmatmul.mubr.msk.f32.vlgmr.msra.gmra.mrb[10].mxu1 %vm66_vm0, %v898_v32 }
0x1411   :  { %v967_v35 = vpop.f32.mrb[10].mxu1 }
0x1412   :  { %v971_v36 = vadd.f32 %v967_v35, %v193_v33  ;;  %v1709_v37 = vpop.f32.mrb[11].mxu1 }
0x1414   :  { %1935 = vtanh.f32 %v971_v36  ;;  %v1530_v39 = vmul.f32 -1.442695, %v971_v36 }
0x1416   :  { %1937 = vpow2.f32 %v1530_v39 }
0x141e   :  { %v1936_v38 = vpop.eup %1935 }
0x141f   :  { %981 = vrot.lane.b32.xlu0 %v1936_v38, %s2018_s17 }
0x1420   :  { %v1938_v40 = vpop.eup %1937 }
0x1421   :  { %v975_v41 = vadd.f32 1.0, %v1938_v40 }
0x1423   :  { %1939 = vrcp.f32 %v975_v41 }
0x142d   :  { %v1940_v42 = vpop.eup %1939 }
0x142e   :  { %v979_v10 = vmul.f32 %v1940_v42, %v889_v26 }
0x1491   :  { %v982_v43 = vpop.permute.xlu0 %981 }
0x1492   :  { %v984_v44 = vmul.f32 %v1940_v42, %v982_v43 }
0x1494   :  { %986 = vrot.lane.b32.xlu1 %v984_v44, %s2019_s3 }
0x1498   :  { %997 = vrot.lane.b32.xlu1 %v2138_v49, %s2018_s17 }
0x149c   :  { %1003 = vrot.lane.b32.xlu1 %v2196_v54, %s2019_s3 }
0x14a0   :  { %1009 = vrot.lane.b32.xlu1 %v895_v29, %s2022_s0 }
0x1506   :  { %v987_v34 = vpop.permute.xlu1 %986 }
0x1507   :  { %v989_v45 = vadd.f32 %v987_v34, %v979_v10 }
0x1509   :  { %1941 = vtanh.f32 %v989_v45 }
0x1513   :  { %v1942_v46 = vpop.eup %1941 }
0x1514   :  { %992 = vrot.lane.b32.xlu0 %v1942_v46, %s2020_s18 }
0x1518   :  { %1000 = vrot.lane.b32.xlu0 %v2151_v6, %s2023_s10 }
0x151c   :  { %1006 = vrot.lane.b32.xlu0 %v795_v12, %s2020_s18 }
0x151d   :  { %1952 = shalt.err (!%p1949_p2)  }
0x151e   :  { %s1953_s18 = scalar_lea.vmem %s34_s12, 8192  ;;  %p1958_p4 = scmp.lt.s32.totalorder %s34_s12, %s34_s12 }
0x151f   :  { %p1954_p3 = scmp.ne.s32.totalorder %s34_s12, %s1953_s18  ;;  %p1959_p5 = scmp.lt.s32.totalorder %s1953_s18, %s1953_s18 }
0x1521   :  { %p1960_p6 = por %p1959_p5, %p1958_p4 }
0x1523   :  { %p1961_p7 = pnand %p1960_p6, %p1954_p3 }
0x1525   :  { %1964 = shalt.err (!%p1961_p7)  }
0x1526   :  { %36 = dma.hbm_to_vmem [thread:$0]  %s2292_s4, 8192, %s34_s12, [#allocation4] }
0x1527   :  { %s1965_s24 = scalar_lea.hbm %s2294_s6, 8192 }
0x1528   :  { %p1966_p8 = scmp.ne.s32.totalorder %s2294_s6, %s1965_s24  ;;  %p1969_p9 = scmp.lt.u32.totalorder %s1965_s24, %s2294_s6 }
0x152a   :  { %p1971_p10 = pnand %p1969_p9, %p1966_p8 }
0x152c   :  { %1974 = shalt.err (!%p1971_p10)  }
0x152d   :  { %s1975_s29 = scalar_lea.vmem %s46_s14, 8192  ;;  %p1980_p12 = scmp.lt.s32.totalorder %s46_s14, %s46_s14 }
0x152e   :  { %p1976_p11 = scmp.ne.s32.totalorder %s46_s14, %s1975_s29  ;;  %p1981_p13 = scmp.lt.s32.totalorder %s1975_s29, %s1975_s29 }
0x1530   :  { %p1982_p0 = por %p1981_p13, %p1980_p12 }
0x1532   :  { %p1983_p1 = pnand %p1982_p0, %p1976_p11 }
0x1534   :  { %1986 = shalt.err (!%p1983_p1)  }
0x1535   :  { %48 = dma.hbm_to_vmem [thread:$0]  %s2294_s6, 8192, %s46_s14, [#allocation4 + $0x1]  ;;  %v998_v47 = vpop.permute.xlu1 %997  ;;  %vm1017_vm2 = vcmask 261120   ;;  %vm1019_vm3 = vcmask 392192   ;;  %vm1021_vm4 = vcmask 523264   ;;  %vm1023_vm5 = vcmask 654336  }
0x1536   :  { %s2026_s9 = smov 64   ;;  %v1016_v50 = vsel %vm66_vm0, %v2118_v30, %v998_v47  ;;  %vm1025_vm6 = vcmask 785408   ;;  %vm1027_vm7 = vcmask 916480  }
0x1539   :  { %v1004_v53 = vpop.permute.xlu1 %1003 }
0x153d   :  { %v1010_v57 = vpop.permute.xlu1 %1009 }
0x1586   :  { %v993_v49 = vpop.permute.xlu0 %992 }
0x1587   :  { %v995_v6 = vmul.f32 %v1940_v42, %v993_v49 }
0x1589   :  { %1013 = vrot.lane.b32.xlu0 %v995_v6, %s2026_s9 }
0x158a   :  { %v1001_v48 = vpop.permute.xlu0 %1000 }
0x158b   :  { %v1018_v51 = vsel %vm1017_vm2, %v1016_v50, %v1001_v48 }
0x158c   :  { %v1020_v52 = vsel %vm1019_vm3, %v1018_v51, %v2182_v31 }
0x158d   :  { %v1022_v54 = vsel %vm1021_vm4, %v1020_v52, %v1004_v53 }
0x158e   :  { %v1007_v55 = vpop.permute.xlu0 %1006 }
0x158f   :  { %v1024_v56 = vsel %vm1023_vm5, %v1022_v54, %v1007_v55 }
0x1590   :  { %v1026_v58 = vsel %vm1025_vm6, %v1024_v56, %v1010_v57 }
0x15fb   :  { %v1014_v59 = vpop.permute.xlu0 %1013 }
0x15fc   :  { %v2254_v60 = vsel %vm1027_vm7, %v1026_v58, %v1014_v59 }
0x15fd   :  { %2009 = dma.done.wait [#allocation4], 8192 }
0x15fe   :  { %2010 = vsyncadd [#allocation4], 4294959104  ;;  %1183 = vmatprep.mubr.f32.mxu0 %v2017_v8  ;;  %1254 = vmatprep.mubr.f32.mxu1 %v2017_v8  ;;  %v1034_v30 = vld [vmem:[#allocation2 + $0x8] sm:$0xff]  ;;  %v1036_v61 = vld [vmem:[#allocation2 + $0x18] sm:$0xff] }
0x15ff   :  { %v1038_v31 = vld [vmem:[#allocation2 + $0x28] sm:$0xff]  ;;  %v1040_v63 = vld [vmem:[#allocation2 + $0x38] sm:$0xff]  ;;  %v1033_v0 = vld [vmem:[#allocation2] sm:$0xff] }
0x1600   :  { %v1738_v62 = vpack.c.bf16 %v1038_v31, %v1034_v30  ;;  %v1037_v1 = vld [vmem:[#allocation2 + $0x20] sm:$0xff]  ;;  %v1770_v7 = vpack.c.bf16 %v1040_v63, %v1036_v61  ;;  %v1035_v3 = vld [vmem:[#allocation2 + $0x10] sm:$0xff]  ;;  %v1042_v9 = vld [vmem:[#allocation2 + $0x48] sm:$0xff] }
0x1601   :  { %v1740_v2 = vpack.c.bf16 %v1037_v1, %v1033_v0  ;;  %v1039_v5 = vld [vmem:[#allocation2 + $0x30] sm:$0xff]  ;;  %v1046_v12 = vld [vmem:[#allocation2 + $0x68] sm:$0xff]  ;;  %v1044_v13 = vld [vmem:[#allocation2 + $0x58] sm:$0xff] }
0x1602   :  { %1739 = vmatprep.subr.bf16.mxu0 %v1738_v62  ;;  %v1772_v11 = vpack.c.bf16 %v1039_v5, %v1035_v3  ;;  %v1048_v14 = vld [vmem:[#allocation2 + $0x78] sm:$0xff]  ;;  %1771 = vmatprep.subr.bf16.mxu1 %v1770_v7  ;;  %v1742_v8 = vpack.c.bf16 %v1046_v12, %v1042_v9  ;;  %v1041_v16 = vld [vmem:[#allocation2 + $0x40] sm:$0xff]  ;;  %v1043_v18 = vld [vmem:[#allocation2 + $0x50] sm:$0xff] }
0x1603   :  { %1741 = vmatpush1.bf16.msra.mxu0 %v1740_v2  ;;  %v1774_v15 = vpack.c.bf16 %v1048_v14, %v1044_v13  ;;  %v1045_v17 = vld [vmem:[#allocation2 + $0x60] sm:$0xff]  ;;  %v1047_v20 = vld [vmem:[#allocation2 + $0x70] sm:$0xff]  ;;  %v1050_v21 = vld [vmem:[#allocation2 + $0x88] sm:$0xff] }
0x1604   :  { %1773 = vmatpush1.bf16.msra.mxu1 %v1772_v11  ;;  %v1744_v19 = vpack.c.bf16 %v1045_v17, %v1041_v16  ;;  %v1054_v4 = vld [vmem:[#allocation2 + $0xa8] sm:$0xff]  ;;  %1743 = vmatprep.subr.bf16.mxu0 %v1742_v8  ;;  %v1776_v22 = vpack.c.bf16 %v1047_v20, %v1043_v18  ;;  %v1052_v24 = vld [vmem:[#allocation2 + $0x98] sm:$0xff]  ;;  %v1049_v26 = vld [vmem:[#allocation2 + $0x80] sm:$0xff] }
0x1605   :  { %1775 = vmatprep.subr.bf16.mxu1 %v1774_v15  ;;  %v1746_v23 = vpack.c.bf16 %v1054_v4, %v1050_v21  ;;  %v1056_v25 = vld [vmem:[#allocation2 + $0xb8] sm:$0xff]  ;;  %v1053_v28 = vld [vmem:[#allocation2 + $0xa0] sm:$0xff]  ;;  %v1051_v29 = vld [vmem:[#allocation2 + $0x90] sm:$0xff] }
0x1606   :  { %v1778_v27 = vpack.c.bf16 %v1056_v25, %v1052_v24  ;;  %v1055_v32 = vld [vmem:[#allocation2 + $0xb0] sm:$0xff]  ;;  %v1748_v33 = vpack.c.bf16 %v1053_v28, %v1049_v26  ;;  %v1058_v35 = vld [vmem:[#allocation2 + $0xc8] sm:$0xff]  ;;  %v1060_v37 = vld [vmem:[#allocation2 + $0xd8] sm:$0xff] }
0x1607   :  { %1745 = vmatpush1.bf16.msra.mxu0 %v1744_v19  ;;  %v1062_v36 = vld [vmem:[#allocation2 + $0xe8] sm:$0xff]  ;;  %v1780_v38 = vpack.c.bf16 %v1055_v32, %v1051_v29  ;;  %v1064_v40 = vld [vmem:[#allocation2 + $0xf8] sm:$0xff]  ;;  %v1057_v41 = vld [vmem:[#allocation2 + $0xc0] sm:$0xff]  ;;  %v1099_v32 = vlaneseq }
0x1608   :  { %1777 = vmatpush1.bf16.msra.mxu1 %v1776_v22  ;;  %1747 = vmatprep.subr.bf16.mxu0 %v1746_v23  ;;  %v1750_v39 = vpack.c.bf16 %v1062_v36, %v1058_v35  ;;  %v1061_v42 = vld [vmem:[#allocation2 + $0xe0] sm:$0xff]  ;;  %v1782_v43 = vpack.c.bf16 %v1064_v40, %v1060_v37  ;;  %v1059_v44 = vld [vmem:[#allocation2 + $0xd0] sm:$0xff]  ;;  %v1066_v34 = vld [vmem:[#allocation2 + $0x108] sm:$0xff] }
0x1609   :  { %1779 = vmatprep.subr.bf16.mxu1 %v1778_v27  ;;  %v1063_v10 = vld [vmem:[#allocation2 + $0xf0] sm:$0xff]  ;;  %v1070_v45 = vld [vmem:[#allocation2 + $0x128] sm:$0xff]  ;;  %v1068_v46 = vld [vmem:[#allocation2 + $0x118] sm:$0xff]  ;;  %v1752_v6 = vpack.c.bf16 %v1061_v42, %v1057_v41 }
0x160a   :  { %v1072_v49 = vld [vmem:[#allocation2 + $0x138] sm:$0xff]  ;;  %v1784_v47 = vpack.c.bf16 %v1063_v10, %v1059_v44  ;;  %v1754_v48 = vpack.c.bf16 %v1070_v45, %v1066_v34  ;;  %v1065_v50 = vld [vmem:[#allocation2 + $0x100] sm:$0xff]  ;;  %v1067_v52 = vld [vmem:[#allocation2 + $0x110] sm:$0xff] }
0x160b   :  { %1749 = vmatpush1.bf16.msra.mxu0 %v1748_v33  ;;  %v1069_v51 = vld [vmem:[#allocation2 + $0x120] sm:$0xff]  ;;  %v1786_v53 = vpack.c.bf16 %v1072_v49, %v1068_v46  ;;  %v1071_v54 = vld [vmem:[#allocation2 + $0x130] sm:$0xff]  ;;  %v1074_v55 = vld [vmem:[#allocation2 + $0x148] sm:$0xff]  ;;  %v1100_v33 = vshrl.u32 %v1099_v32, 7 }
0x160c   :  { %1781 = vmatpush1.bf16.msra.mxu1 %v1780_v38  ;;  %1751 = vmatprep.subr.bf16.mxu0 %v1750_v39  ;;  %v1078_v56 = vld [vmem:[#allocation2 + $0x168] sm:$0xff]  ;;  %v1076_v57 = vld [vmem:[#allocation2 + $0x158] sm:$0xff]  ;;  %v1756_v59 = vpack.c.bf16 %v1069_v51, %v1065_v50  ;;  %v1788_v30 = vpack.c.bf16 %v1071_v54, %v1067_v52  ;;  %v1073_v61 = vld [vmem:[#allocation2 + $0x140] sm:$0xff] }
0x160d   :  { %1783 = vmatprep.subr.bf16.mxu1 %v1782_v43  ;;  %v1080_v58 = vld [vmem:[#allocation2 + $0x178] sm:$0xff]  ;;  %v1758_v31 = vpack.c.bf16 %v1078_v56, %v1074_v55  ;;  %v1077_v62 = vld [vmem:[#allocation2 + $0x160] sm:$0xff]  ;;  %v1075_v63 = vld [vmem:[#allocation2 + $0x150] sm:$0xff]  ;;  %v1101_v35 = vsub.s32 0, %v1100_v33  ;;  %v1109_v37 = vsub.s32 2, %v1100_v33  ;;  %v1105_v38 = vsub.s32 1, %v1100_v33 }
0x160e   :  { %v1790_v0 = vpack.c.bf16 %v1080_v58, %v1076_v57  ;;  %v1079_v1 = vld [vmem:[#allocation2 + $0x170] sm:$0xff]  ;;  %v1082_v7 = vld [vmem:[#allocation2 + $0x188] sm:$0xff]  ;;  %v1084_v3 = vld [vmem:[#allocation2 + $0x198] sm:$0xff]  ;;  %v1760_v9 = vpack.c.bf16 %v1077_v62, %v1073_v61  ;;  %v1113_v39 = vsub.s32 3, %v1100_v33 }
0x160f   :  { %1753 = vmatpush1.bf16.msra.mxu0 %v1752_v6  ;;  %v1086_v2 = vld [vmem:[#allocation2 + $0x1a8] sm:$0xff]  ;;  %v1088_v5 = vld [vmem:[#allocation2 + $0x1b8] sm:$0xff]  ;;  %v1792_v11 = vpack.c.bf16 %v1079_v1, %v1075_v63  ;;  %v1081_v13 = vld [vmem:[#allocation2 + $0x180] sm:$0xff] }
0x1610   :  { %1785 = vmatpush1.bf16.msra.mxu1 %v1784_v47  ;;  %1755 = vmatprep.subr.bf16.mxu0 %v1754_v48  ;;  %v1762_v12 = vpack.c.bf16 %v1086_v2, %v1082_v7  ;;  %v1085_v14 = vld [vmem:[#allocation2 + $0x1a0] sm:$0xff]  ;;  %v1083_v8 = vld [vmem:[#allocation2 + $0x190] sm:$0xff]  ;;  %v1794_v15 = vpack.c.bf16 %v1088_v5, %v1084_v3  ;;  %v1090_v17 = vld [vmem:[#allocation2 + $0x1c8] sm:$0xff] }
0x1611   :  { %1787 = vmatprep.subr.bf16.mxu1 %v1786_v53  ;;  %v1087_v16 = vld [vmem:[#allocation2 + $0x1b0] sm:$0xff]  ;;  %v1094_v18 = vld [vmem:[#allocation2 + $0x1e8] sm:$0xff]  ;;  %v1092_v19 = vld [vmem:[#allocation2 + $0x1d8] sm:$0xff]  ;;  %v1764_v21 = vpack.c.bf16 %v1085_v14, %v1081_v13 }
0x1612   :  { %v1096_v20 = vld [vmem:[#allocation2 + $0x1f8] sm:$0xff]  ;;  %v1796_v4 = vpack.c.bf16 %v1087_v16, %v1083_v8  ;;  %v1766_v22 = vpack.c.bf16 %v1094_v18, %v1090_v17  ;;  %v1089_v23 = vld [vmem:[#allocation2 + $0x1c0] sm:$0xff]  ;;  %v1091_v26 = vld [vmem:[#allocation2 + $0x1d0] sm:$0xff] }
0x1613   :  { %1757 = vmatpush1.bf16.msra.mxu0 %v1756_v59  ;;  %v1093_v24 = vld [vmem:[#allocation2 + $0x1e0] sm:$0xff]  ;;  %v1798_v25 = vpack.c.bf16 %v1096_v20, %v1092_v19  ;;  %v1095_v27 = vld [vmem:[#allocation2 + $0x1f0] sm:$0xff] }
0x1614   :  { %1789 = vmatpush1.bf16.msra.mxu1 %v1788_v30  ;;  %1759 = vmatprep.subr.bf16.mxu0 %v1758_v31  ;;  %v1768_v28 = vpack.c.bf16 %v1093_v24, %v1089_v23  ;;  %v1800_v29 = vpack.c.bf16 %v1095_v27, %v1091_v26  ;;  %v1097_v36 = vld [vmem:[%s2293_s5] sm:$0xf] }
0x1615   :  { %1791 = vmatprep.subr.bf16.mxu1 %v1790_v0  ;;  %v1102_v40 = vrot.slane %v1097_v36, %v1101_v35  ;;  %v1110_v41 = vrot.slane %v1097_v36, %v1109_v37  ;;  %v1106_v42 = vrot.slane %v1097_v36, %v1105_v38  ;;  %v1114_v43 = vrot.slane %v1097_v36, %v1113_v39 }
0x1617   :  { %1761 = vmatpush1.bf16.msra.mxu0 %v1760_v9 }
0x1618   :  { %1793 = vmatpush1.bf16.msra.mxu1 %v1792_v11  ;;  %1763 = vmatprep.subr.bf16.mxu0 %v1762_v12 }
0x1619   :  { %1795 = vmatprep.subr.bf16.mxu1 %v1794_v15 }
0x161b   :  { %1765 = vmatpush1.bf16.msra.mxu0 %v1764_v21 }
0x161c   :  { %1797 = vmatpush1.bf16.msra.mxu1 %v1796_v4  ;;  %1767 = vmatprep.subr.bf16.mxu0 %v1766_v22 }
0x161d   :  { %1799 = vmatprep.subr.bf16.mxu1 %v1798_v25 }
0x161f   :  { %1769 = vmatpush1.bf16.msra.mxu0 %v1768_v28 }
0x1620   :  { %1801 = vmatpush1.bf16.msra.mxu1 %v1800_v29 }
0x1622   :  { %1184 = vmatmul.mubr.f32.vlgmr.msra.gmra.mrb[12].mxu0 %v2254_v60 }
0x1623   :  { %1255 = vmatmul.mubr.f32.vlgmr.msra.gmra.mrb[12].mxu1 %v2254_v60 }
0x16f5   :  { %v1185_v44 = vpop.f32.mrb[12].mxu0 }
0x16f6   :  { %v2263_v10 = vadd.f32 %v1185_v44, %v1102_v40  ;;  %v1256_v34 = vpop.f32.mrb[12].mxu1  ;;  %v1187_v45 = vpop.f32.mrb[13].mxu0 }
0x16f7   :  { %v2265_v60 = vadd.f32 %v1256_v34, %v1110_v41  ;;  %v1188_v46 = vadd.f32 %v1187_v45, %v1106_v42  ;;  %v1258_v49 = vpop.f32.mrb[13].mxu1 }
0x16f8   :  { %v1261_v6 = vmax.f32 %v2263_v10, 0.0  ;;  %v1259_v47 = vadd.f32 %v1258_v49, %v1114_v43 }
0x16f9   :  { %v1263_v48 = vmax.f32 %v2265_v60, 0.0  ;;  %v1262_v50 = vmax.f32 %v1188_v46, 0.0 }
0x16fa   :  { %v1264_v51 = vmax.f32 %v1259_v47, 0.0 }
0x16fb   :  { %2011 = dma.done.wait [#allocation4 + $0x1], 8192 }
0x16fc   :  { %2012 = vsyncadd [#allocation4 + $0x1], 4294959104  ;;  %1403 = vmatprep.mubr.f32.mxu0 %v1262_v50  ;;  %1473 = vmatprep.mubr.f32.mxu1 %v1264_v51  ;;  %v1284_v52 = vld [vmem:[#allocation3 + $0x80] sm:$0xff]  ;;  %v1285_v53 = vld [vmem:[#allocation3 + $0x88] sm:$0xff]  ;;  %s2027_s11 = smov [#allocation5]  }
0x16fd   :  { %v1268_v54 = vld [vmem:[#allocation3] sm:$0xff]  ;;  %v1802_v55 = vpack.c.bf16 %v1285_v53, %v1284_v52  ;;  %v1269_v56 = vld [vmem:[#allocation3 + $0x8] sm:$0xff]  ;;  %v1286_v62 = vld [vmem:[#allocation3 + $0x90] sm:$0xff]  ;;  %s1486_s12 = sshll.u32 %s2027_s11, 4  ;;  %s1487_s12 = int_to_ptr.vmem [resolvable:$true] %s1486_s12 }
0x16fe   :  { %v1316_v57 = vld [vmem:[#allocation3 + $0x180] sm:$0xff]  ;;  %v1317_v58 = vld [vmem:[#allocation3 + $0x188] sm:$0xff]  ;;  %v1804_v59 = vpack.c.bf16 %v1269_v56, %v1268_v54  ;;  %v1287_v0 = vld [vmem:[#allocation3 + $0x98] sm:$0xff]  ;;  %s1987_s13 = scalar_lea.vmem %s1487_s12, 128  ;;  %p1992_p3 = scmp.lt.s32.totalorder %s1487_s12, %s1487_s12 }
0x16ff   :  { %v1834_v30 = vpack.c.bf16 %v1317_v58, %v1316_v57  ;;  %v1300_v31 = vld [vmem:[#allocation3 + $0x100] sm:$0xff]  ;;  %v1301_v61 = vld [vmem:[#allocation3 + $0x108] sm:$0xff]  ;;  %1803 = vmatprep.subr.bf16.mxu0 %v1802_v55  ;;  %v1270_v1 = vld [vmem:[#allocation3 + $0x10] sm:$0xff]  ;;  %v1806_v2 = vpack.c.bf16 %v1287_v0, %v1286_v62  ;;  %p1988_p2 = scmp.ne.s32.totalorder %s1487_s12, %s1987_s13  ;;  %p1993_p4 = scmp.lt.s32.totalorder %s1987_s13, %s1987_s13 }
0x1700   :  { %v1836_v63 = vpack.c.bf16 %v1301_v61, %v1300_v31  ;;  %v1271_v7 = vld [vmem:[#allocation3 + $0x18] sm:$0xff]  ;;  %1805 = vmatpush3.bf16.msra.mxu0 %v1804_v59  ;;  %v1318_v5 = vld [vmem:[#allocation3 + $0x190] sm:$0xff]  ;;  %v1288_v14 = vld [vmem:[#allocation3 + $0xa0] sm:$0xff] }
0x1701   :  { %1835 = vmatprep.subr.bf16.mxu1 %v1834_v30  ;;  %v1808_v3 = vpack.c.bf16 %v1271_v7, %v1270_v1  ;;  %v1319_v9 = vld [vmem:[#allocation3 + $0x198] sm:$0xff]  ;;  %v1302_v11 = vld [vmem:[#allocation3 + $0x110] sm:$0xff]  ;;  %v1289_v8 = vld [vmem:[#allocation3 + $0xa8] sm:$0xff]  ;;  %1807 = vmatprep.subr.bf16.mxu0 %v1806_v2  ;;  %p1994_p5 = por %p1993_p4, %p1992_p3 }
0x1702   :  { %1837 = vmatpush3.bf16.msra.mxu1 %v1836_v63  ;;  %v1838_v12 = vpack.c.bf16 %v1319_v9, %v1318_v5  ;;  %v1303_v13 = vld [vmem:[#allocation3 + $0x118] sm:$0xff]  ;;  %v1810_v16 = vpack.c.bf16 %v1289_v8, %v1288_v14  ;;  %v1272_v17 = vld [vmem:[#allocation3 + $0x20] sm:$0xff]  ;;  %v1273_v18 = vld [vmem:[#allocation3 + $0x28] sm:$0xff] }
0x1703   :  { %v1840_v15 = vpack.c.bf16 %v1303_v13, %v1302_v11  ;;  %v1320_v19 = vld [vmem:[#allocation3 + $0x1a0] sm:$0xff]  ;;  %v1321_v20 = vld [vmem:[#allocation3 + $0x1a8] sm:$0xff]  ;;  %v1812_v22 = vpack.c.bf16 %v1273_v18, %v1272_v17  ;;  %v1290_v24 = vld [vmem:[#allocation3 + $0xb0] sm:$0xff]  ;;  %p1995_p6 = pnand %p1994_p5, %p1988_p2 }
0x1704   :  { %1839 = vmatprep.subr.bf16.mxu1 %v1838_v12  ;;  %v1304_v21 = vld [vmem:[#allocation3 + $0x120] sm:$0xff]  ;;  %v1305_v4 = vld [vmem:[#allocation3 + $0x128] sm:$0xff]  ;;  %1809 = vmatpush3.bf16.msra.mxu0 %v1808_v3  ;;  %v1842_v23 = vpack.c.bf16 %v1321_v20, %v1320_v19  ;;  %v1291_v25 = vld [vmem:[#allocation3 + $0xb8] sm:$0xff] }
0x1705   :  { %v1274_v26 = vld [vmem:[#allocation3 + $0x30] sm:$0xff]  ;;  %1811 = vmatprep.subr.bf16.mxu0 %v1810_v16  ;;  %v1844_v27 = vpack.c.bf16 %v1305_v4, %v1304_v21  ;;  %v1814_v28 = vpack.c.bf16 %v1291_v25, %v1290_v24  ;;  %v1275_v29 = vld [vmem:[#allocation3 + $0x38] sm:$0xff]  ;;  %v1292_v38 = vld [vmem:[#allocation3 + $0xc0] sm:$0xff] }
0x1706   :  { %1841 = vmatpush3.bf16.msra.mxu1 %v1840_v15  ;;  %v1322_v32 = vld [vmem:[#allocation3 + $0x1b0] sm:$0xff]  ;;  %v1323_v33 = vld [vmem:[#allocation3 + $0x1b8] sm:$0xff]  ;;  %v1293_v39 = vld [vmem:[#allocation3 + $0xc8] sm:$0xff]  ;;  %v1816_v40 = vpack.c.bf16 %v1275_v29, %v1274_v26 }
0x1707   :  { %1843 = vmatprep.subr.bf16.mxu1 %v1842_v23  ;;  %v1846_v35 = vpack.c.bf16 %v1323_v33, %v1322_v32  ;;  %v1306_v36 = vld [vmem:[#allocation3 + $0x130] sm:$0xff]  ;;  %v1307_v37 = vld [vmem:[#allocation3 + $0x138] sm:$0xff]  ;;  %v1324_v41 = vld [vmem:[#allocation3 + $0x1c0] sm:$0xff]  ;;  %v1818_v44 = vpack.c.bf16 %v1293_v39, %v1292_v38 }
0x1708   :  { %1813 = vmatpush3.bf16.msra.mxu0 %v1812_v22  ;;  %v1325_v42 = vld [vmem:[#allocation3 + $0x1c8] sm:$0xff]  ;;  %v1848_v43 = vpack.c.bf16 %v1307_v37, %v1306_v36  ;;  %v1276_v34 = vld [vmem:[#allocation3 + $0x40] sm:$0xff]  ;;  %v1294_v50 = vld [vmem:[#allocation3 + $0xd0] sm:$0xff] }
0x1709   :  { %1815 = vmatprep.subr.bf16.mxu0 %v1814_v28  ;;  %v1277_v45 = vld [vmem:[#allocation3 + $0x48] sm:$0xff]  ;;  %v1308_v46 = vld [vmem:[#allocation3 + $0x140] sm:$0xff]  ;;  %v1850_v49 = vpack.c.bf16 %v1325_v42, %v1324_v41  ;;  %v1295_v51 = vld [vmem:[#allocation3 + $0xd8] sm:$0xff] }
0x170a   :  { %1845 = vmatpush3.bf16.msra.mxu1 %v1844_v27  ;;  %v1309_v47 = vld [vmem:[#allocation3 + $0x148] sm:$0xff]  ;;  %v1326_v52 = vld [vmem:[#allocation3 + $0x1d0] sm:$0xff]  ;;  %v1327_v53 = vld [vmem:[#allocation3 + $0x1d8] sm:$0xff]  ;;  %v1820_v54 = vpack.c.bf16 %v1277_v45, %v1276_v34  ;;  %v1822_v56 = vpack.c.bf16 %v1295_v51, %v1294_v50 }
0x170b   :  { %1847 = vmatprep.subr.bf16.mxu1 %v1846_v35  ;;  %v1852_v55 = vpack.c.bf16 %v1309_v47, %v1308_v46  ;;  %v1278_v57 = vld [vmem:[#allocation3 + $0x50] sm:$0xff]  ;;  %v1279_v58 = vld [vmem:[#allocation3 + $0x58] sm:$0xff]  ;;  %v1854_v30 = vpack.c.bf16 %v1327_v53, %v1326_v52  ;;  %v1296_v61 = vld [vmem:[#allocation3 + $0xe0] sm:$0xff] }
0x170c   :  { %1817 = vmatpush3.bf16.msra.mxu0 %v1816_v40  ;;  %v1310_v59 = vld [vmem:[#allocation3 + $0x150] sm:$0xff]  ;;  %v1311_v31 = vld [vmem:[#allocation3 + $0x158] sm:$0xff]  ;;  %v1297_v62 = vld [vmem:[#allocation3 + $0xe8] sm:$0xff]  ;;  %v1824_v1 = vpack.c.bf16 %v1279_v58, %v1278_v57 }
0x170d   :  { %1819 = vmatprep.subr.bf16.mxu0 %v1818_v44  ;;  %v1328_v63 = vld [vmem:[#allocation3 + $0x1e0] sm:$0xff]  ;;  %v1329_v0 = vld [vmem:[#allocation3 + $0x1e8] sm:$0xff]  ;;  %v1856_v7 = vpack.c.bf16 %v1311_v31, %v1310_v59  ;;  %v1826_v2 = vpack.c.bf16 %v1297_v62, %v1296_v61  ;;  %v1298_v13 = vld [vmem:[#allocation3 + $0xf0] sm:$0xff] }
0x170e   :  { %1849 = vmatpush3.bf16.msra.mxu1 %v1848_v43  ;;  %v1280_v3 = vld [vmem:[#allocation3 + $0x60] sm:$0xff]  ;;  %v1281_v5 = vld [vmem:[#allocation3 + $0x68] sm:$0xff]  ;;  %v1858_v11 = vpack.c.bf16 %v1329_v0, %v1328_v63  ;;  %v1299_v14 = vld [vmem:[#allocation3 + $0xf8] sm:$0xff] }
0x170f   :  { %1851 = vmatprep.subr.bf16.mxu1 %v1850_v49  ;;  %v1312_v9 = vld [vmem:[#allocation3 + $0x160] sm:$0xff]  ;;  %v1313_v12 = vld [vmem:[#allocation3 + $0x168] sm:$0xff]  ;;  %v1330_v8 = vld [vmem:[#allocation3 + $0x1f0] sm:$0xff]  ;;  %v1828_v16 = vpack.c.bf16 %v1281_v5, %v1280_v3  ;;  %v1830_v18 = vpack.c.bf16 %v1299_v14, %v1298_v13 }
0x1710   :  { %1821 = vmatpush3.bf16.msra.mxu0 %v1820_v54  ;;  %v1331_v15 = vld [vmem:[#allocation3 + $0x1f8] sm:$0xff]  ;;  %v1860_v17 = vpack.c.bf16 %v1313_v12, %v1312_v9  ;;  %v1282_v19 = vld [vmem:[#allocation3 + $0x70] sm:$0xff]  ;;  %v1531_v26 = vld [vmem:[%s2295_s7] ss:$0 sm:$0xff] }
0x1711   :  { %1823 = vmatprep.subr.bf16.mxu0 %v1822_v56  ;;  %v1283_v20 = vld [vmem:[#allocation3 + $0x78] sm:$0xff]  ;;  %v1862_v21 = vpack.c.bf16 %v1331_v15, %v1330_v8  ;;  %v1314_v4 = vld [vmem:[#allocation3 + $0x170] sm:$0xff] }
0x1712   :  { %1853 = vmatpush3.bf16.msra.mxu1 %v1852_v55  ;;  %v1315_v22 = vld [vmem:[#allocation3 + $0x178] sm:$0xff]  ;;  %v1832_v23 = vpack.c.bf16 %v1283_v20, %v1282_v19 }
0x1713   :  { %1855 = vmatprep.subr.bf16.mxu1 %v1854_v30  ;;  %v1864_v24 = vpack.c.bf16 %v1315_v22, %v1314_v4 }
0x1714   :  { %1825 = vmatpush3.bf16.msra.mxu0 %v1824_v1 }
0x1715   :  { %1827 = vmatprep.subr.bf16.mxu0 %v1826_v2 }
0x1716   :  { %1857 = vmatpush3.bf16.msra.mxu1 %v1856_v7 }
0x1717   :  { %1859 = vmatprep.subr.bf16.mxu1 %v1858_v11 }
0x1718   :  { %1829 = vmatpush3.bf16.msra.mxu0 %v1828_v16 }
0x1719   :  { %1831 = vmatprep.subr.bf16.mxu0 %v1830_v18 }
0x171a   :  { %1861 = vmatpush3.bf16.msra.mxu1 %v1860_v17 }
0x171b   :  { %1863 = vmatprep.subr.bf16.mxu1 %v1862_v21 }
0x171c   :  { %1833 = vmatpush3.bf16.msra.mxu0 %v1832_v23 }
0x171e   :  { %1865 = vmatpush3.bf16.msra.mxu1 %v1864_v24 }
0x171f   :  { %1404 = vmatmul.mubr.f32.vlgmr.msra.gmra.mrb[14].mxu0 %v1261_v6 }
0x1721   :  { %1474 = vmatmul.mubr.f32.vlgmr.msra.gmra.mrb[14].mxu1 %v1263_v48 }
0x17f2   :  { %v1600_v25 = vpop.f32.mrb[14].mxu0 }
0x17f3   :  { %v1601_v27 = vpop.f32.mrb[15].mxu0 }
0x17f4   :  { %v1635_v28 = vpop.f32.mrb[14].mxu1  ;;  %v1602_v29 = vadd.f32 %v1601_v27, %v1600_v25 }
0x17f5   :  { %v1636_v32 = vpop.f32.mrb[15].mxu1 }
0x17f6   :  { %v1637_v33 = vadd.f32 %v1636_v32, %v1635_v28  ;;  %v1406_v35 = vadd.f32 %v1602_v29, %v1531_v26 }
0x17f8   :  { %v1476_v36 = vadd.f32 %v1637_v33, %v1406_v35 }
0x17fa   :  { %1479 = vst [vmem:[#allocation5] sm:$0xff] %v1476_v36 }
0x17fb   :  { %1998 = shalt.err (!%p1995_p6)
}
0x17fc   :  { %s1999_s1 = scalar_lea.hbm %s2296_s8, 128 }
0x17fd   :  { %p2000_p7 = scmp.ne.s32.totalorder %s2296_s8, %s1999_s1  ;;  %p2003_p8 = scmp.lt.u32.totalorder %s1999_s1, %s2296_s8 }
0x17ff   :  { %p2005_p9 = pnand %p2003_p8, %p2000_p7 }
0x1801   :  { %2008 = shalt.err (!%p2005_p9)
}
0x1802   :  { %1489 = dma.vmem_to_hbm [thread:$0]  %s1487_s12, 128, %s2296_s8, [#allocation6]  }
0x1803   :  { %2013 = dma.done.wait [#allocation6], 128  }
0x1804   :  { %2014 = vsyncadd [#allocation6], 4294967168 }
0x1805   :  { %1493 = vsyncpa [#allocation6], 1 }
0x1806   :  { %1494 = vsyncmov [#allocation4] }
0x1809   :  { %s1495_s18 = vpop.sfrf %1494 }
0x180a   :  { %p1532_p10 = scmp.ne.s32.totalorder %s1495_s18, 0 }
0x180c   :  { %1499 = shalt.err (%p1532_p10)  }
0x180d   :  { %1501 = vsyncmov [#allocation4 + $0x1] }
0x1810   :  { %s1502_s20 = vpop.sfrf %1501 }
0x1811   :  { %p1533_p11 = scmp.ne.s32.totalorder %s1502_s20, 0 }
0x1813   :  { %1506 = shalt.err (%p1533_p11)  }

</bundles_post_ra>
